<compile_context>
chip_gen: v5e
topology: v5e:2x2
jax: 0.10.0
libtpu: 0.0.40
codegen_flags: <defaults>
</compile_context>

<pallas_src>
import jax
import jax.numpy as jnp
from jax.experimental import pallas as pl
from jax.experimental.pallas import tpu as pltpu

# F.rrelu with training=False uses the fixed negative slope (lower+upper)/2.
RRELU_SLOPE = (1.0 / 8.0 + 1.0 / 3.0) / 2.0


def _round_up(x, m):
  return (x + m - 1) // m * m


def _vmem_budget_bytes():
  """Generation-aware VMEM budget: physical capacity minus headroom."""
  try:
    cap = int(getattr(pltpu.get_tpu_info(), "vmem_capacity_bytes", 64 << 20))
  except Exception:  # pragma: no cover - conservative fallback off-TPU
    cap = 64 << 20
  return max(cap - (12 << 20), 16 << 20)


def _spec(block_shape, index_map, buffers=None):
  """BlockSpec helper; single-buffers constant-index operands when supported."""
  if buffers is None:
    return pl.BlockSpec(block_shape, index_map)
  try:
    return pl.BlockSpec(block_shape, index_map,
                        pipeline_mode=pl.Buffered(buffer_count=buffers))
  except Exception:
    # Older Pallas without pipeline_mode: fall back to default buffering.
    return pl.BlockSpec(block_shape, index_map)


def _rgcn_fused_kernel(h0_ref, a_ref, r0_ref, hasin_ref, w_ref, out_ref):
  """One grid step == one UnionRGCNLayer; h is carried resident in out_ref."""
  layer = pl.program_id(0)

  @pl.when(layer == 0)
  def _():
    out_ref[...] = h0_ref[...]

  h = out_ref[...]                                      # (NP, DP) f32
  h_bf = h.astype(jnp.bfloat16)

  # Neighbour aggregation on the MXU.  a_ref already has norm folded in.
  neigh = jnp.dot(a_ref[...], h_bf, preferred_element_type=jnp.float32)
  msg_bf = (neigh + r0_ref[...]).astype(jnp.bfloat16)   # (NP, DP)

  # Fused wide matmul: [msg | h | has_in*h] @ [Wn ; We ; Wl - We].
  h_loop_bf = h_bf * hasin_ref[...].astype(jnp.bfloat16)
  y = jnp.concatenate([msg_bf, h_bf, h_loop_bf], axis=1)  # (NP, 3*DP) bf16
  x = jnp.dot(y, w_ref[...], preferred_element_type=jnp.float32)

  out_ref[...] = jnp.where(x >= 0.0, x, x * RRELU_SLOPE)  # rrelu (eval mode)


def _rgcn_layer_rowtile_kernel(h_ref, a_ref, r0_ref, hasin_ref, w_ref, out_ref):
  """Row-tiled single layer: h (full) resident, A'/R0'/has_in/out row-tiled."""
  tm = out_ref.shape[0]
  row0 = pl.multiple_of(pl.program_id(0) * tm, tm)

  h_bf = h_ref[...].astype(jnp.bfloat16)                # (NP, DP)
  neigh = jnp.dot(a_ref[...], h_bf, preferred_element_type=jnp.float32)
  msg_bf = (neigh + r0_ref[...]).astype(jnp.bfloat16)   # (TM, DP)

  h_tile_bf = h_ref[pl.ds(row0, tm), :].astype(jnp.bfloat16)
  h_loop_bf = h_tile_bf * hasin_ref[...].astype(jnp.bfloat16)
  y = jnp.concatenate([msg_bf, h_tile_bf, h_loop_bf], axis=1)  # (TM, 3*DP)
  x = jnp.dot(y, w_ref[...], preferred_element_type=jnp.float32)
  out_ref[...] = jnp.where(x >= 0.0, x, x * RRELU_SLOPE)


def rgcn_cell_forward(init_ent_emb, node_id, src, dst, rel, norm, rel_emb,
                      layer_params, *, force_row_tiling=False, row_tile=None):
  """RGCNCell.forward: embed nodes, then run num_hidden_layers Union layers."""
  h0 = init_ent_emb[node_id]                            # g.ndata['h']   (N, D)
  n, d = h0.shape
  num_layers = len(layer_params)

  np_ = _round_up(n, 128)                               # pad N (rows + A lanes)
  dp = _round_up(d, 128)                                # pad D to full lane width

  # --- graph-structure glue, built once and shared by every layer ----------
  counts = jnp.zeros((n, n), jnp.float32).at[dst, src].add(1.0)     # edge counts
  r0 = jnp.zeros((n, d), jnp.float32).at[dst].add(rel_emb[rel])     # rel messages
  in_deg = jnp.zeros((n,), jnp.int32).at[dst].add(1)
  has_in = (in_deg > 0).astype(jnp.float32)[:, None]                # (N, 1)
  norm2 = norm.reshape(n, 1).astype(jnp.float32)

  # Fold norm into the static tensors (removes a per-layer (NP,DP) multiply
  # and the lane-padded norm input entirely).
  a_scaled = counts * norm2
  r0_scaled = r0 * norm2

  # Zero padding keeps the padded rows / feature lanes exactly zero through
  # every layer (rrelu(0) == 0), so slicing at the end is exact.
  h0_p = jnp.zeros((np_, dp), jnp.float32).at[:n, :d].set(h0)
  a_p = (jnp.zeros((np_, np_), jnp.float32).at[:n, :n].set(a_scaled)
         .astype(jnp.bfloat16))
  r0_p = jnp.zeros((np_, dp), jnp.float32).at[:n, :d].set(r0_scaled)
  hasin_p = jnp.zeros((np_, 1), jnp.float32).at[:n].set(has_in)

  # Per-layer weight stack [Wn ; We ; Wl - We], zero-padded, bf16 for the MXU.
  w_blocks = []
  for (w_neighbor, w_loop, w_evolve) in layer_params:
    wn_p = jnp.zeros((dp, dp), jnp.float32).at[:d, :d].set(w_neighbor)
    we_p = jnp.zeros((dp, dp), jnp.float32).at[:d, :d].set(w_evolve)
    wd_p = jnp.zeros((dp, dp), jnp.float32).at[:d, :d].set(w_loop - w_evolve)
    w_blocks.append(jnp.concatenate([wn_p, we_p, wd_p], axis=0))
  w_stack = jnp.stack(w_blocks, axis=0).astype(jnp.bfloat16)        # (L,3DP,DP)

  # --- VMEM budget (python ints only; safe under jit) -----------------------
  f32b, bf16b = 4, 2
  vmem_budget = _vmem_budget_bytes()
  resident = (np_ * dp * f32b            # h0 (single-buffered)
              + np_ * np_ * bf16b        # A' (single-buffered)
              + np_ * dp * f32b          # R0'
              + np_ * 128 * f32b         # has_in (lane-padded)
              + np_ * dp * f32b)         # out / carried h
  w_stream = 2 * 3 * dp * dp * bf16b     # double-buffered per-layer weights
  scratch_est = np_ * 3 * dp * bf16b + 2 * np_ * dp * f32b  # y + neigh/x
  needed = resident + w_stream + scratch_est + (2 << 20)

  if (not force_row_tiling) and needed <= vmem_budget:
    # ---------------- resident fused path: one call over all layers --------
    cost = pl.CostEstimate(
        flops=2 * num_layers * (np_ * np_ * dp + np_ * 3 * dp * dp),
        transcendentals=0,
        bytes_accessed=(np_ * np_ * bf16b + 3 * np_ * dp * f32b
                        + np_ * 128 * f32b
                        + num_layers * 3 * dp * dp * bf16b))
    out_p = pl.pallas_call(
        _rgcn_fused_kernel,
        out_shape=jax.ShapeDtypeStruct((np_, dp), jnp.float32),
        grid=(num_layers,),
        in_specs=[
            _spec((np_, dp), lambda l: (0, 0), buffers=1),       # h0
            _spec((np_, np_), lambda l: (0, 0), buffers=1),      # A' (bf16)
            _spec((np_, dp), lambda l: (0, 0), buffers=1),       # R0'
            _spec((np_, 1), lambda l: (0, 0), buffers=1),        # has_in
            _spec((pl.Squeezed(), 3 * dp, dp), lambda l: (l, 0, 0)),  # weights
        ],
        out_specs=_spec((np_, dp), lambda l: (0, 0), buffers=1),
        compiler_params=pltpu.CompilerParams(
            dimension_semantics=("arbitrary",),    # layers are sequential
            vmem_limit_bytes=vmem_budget),
        cost_estimate=cost,
    )(h0_p, a_p, r0_p, hasin_p, w_stack)
    return out_p[:n, :d]

  # ---------------- row-tiled per-layer fallback (v7x / large graphs) -------
  # TODO(synk): also tile the A' columns (reduction axis) once a single
  # (row_tile, NP) strip plus the full h no longer fit VMEM.
  if row_tile is not None:
    tm = int(row_tile)
  else:
    tm = 512 if np_ % 512 == 0 else (256 if np_ % 256 == 0 else 128)
  tm = min(tm, np_)
  assert tm % 128 == 0 and np_ % tm == 0
  grid_rows = np_ // tm

  h_cur = h0_p
  for layer_idx in range(num_layers):
    w_layer = w_stack[layer_idx]                        # (3DP, DP) bf16
    h_cur = pl.pallas_call(
        _rgcn_layer_rowtile_kernel,
        out_shape=jax.ShapeDtypeStruct((np_, dp), jnp.float32),
        grid=(grid_rows,),
        in_specs=[
            _spec((np_, dp), lambda i: (0, 0), buffers=1),   # full h (resident)
            _spec((tm, np_), lambda i: (i, 0)),              # A' row tile
            _spec((tm, dp), lambda i: (i, 0)),               # R0' row tile
            _spec((tm, 1), lambda i: (i, 0)),                # has_in row tile
            _spec((3 * dp, dp), lambda i: (0, 0), buffers=1),  # layer weights
        ],
        out_specs=_spec((tm, dp), lambda i: (i, 0)),
        compiler_params=pltpu.CompilerParams(
            dimension_semantics=("parallel",),   # rows independent -> megacore
            vmem_limit_bytes=vmem_budget),
    )(h_cur, a_p, r0_p, hasin_p, w_layer)
  return h_cur[:n, :d]


def _xavier_uniform(key, shape, gain):
  fan_in, fan_out = shape
  a = gain * jnp.sqrt(6.0 / (fan_in + fan_out))
  return jax.random.uniform(key, shape, jnp.float32, -a, a)


if __name__ == "__main__":
  key = jax.random.PRNGKey(0)

  NUM_ENTS = 256     # size of the entity embedding table
  N = 200            # number of nodes in the (sub)graph (pads to 256)
  E = 400            # number of edges
  H_DIM = 32         # h_dim == out_dim (pads to 128 lanes)
  NUM_RELS = 4
  NUM_LAYERS = 2     # num_hidden_layers

  keys = jax.random.split(key, 6)
  init_ent_emb = jax.random.normal(keys[0], (NUM_ENTS, H_DIM), jnp.float32)
  rel_emb = jax.random.normal(keys[1], (NUM_RELS, H_DIM), jnp.float32)
  node_id = jax.random.permutation(keys[2], NUM_ENTS)[:N]          # g.ndata['id']
  src = jax.random.randint(keys[3], (E,), 0, N)
  dst = jax.random.randint(keys[4], (E,), 0, N)
  rel = jax.random.randint(keys[5], (E,), 0, NUM_RELS)

  # g.ndata['norm'] — standard RGCN normalization 1 / in_degree (0 if isolated).
  in_deg = jnp.zeros((N,), jnp.int32).at[dst].add(1)
  norm = jnp.where(in_deg > 0, 1.0 / jnp.maximum(in_deg, 1), 0.0
                   ).astype(jnp.float32)[:, None]                  # (N, 1)

  gain = jnp.sqrt(2.0)  # nn.init.calculate_gain('relu')
  layer_params = []
  for i in range(NUM_LAYERS):
    kw, kl, ke = jax.random.split(jax.random.fold_in(key, 100 + i), 3)
    layer_params.append((
        _xavier_uniform(kw, (H_DIM, H_DIM), gain),   # weight_neighbor
        _xavier_uniform(kl, (H_DIM, H_DIM), gain),   # loop_weight
        _xavier_uniform(ke, (H_DIM, H_DIM), gain),   # evolve_loop_weight
    ))

  forward = jax.jit(rgcn_cell_forward,
                    static_argnames=("force_row_tiling", "row_tile"))

  # Default: resident fused path (one pallas_call over all layers).
  out = forward(init_ent_emb, node_id, src, dst, rel, norm, rel_emb,
                layer_params)
  jax.block_until_ready(out)
  assert out.shape == (N, H_DIM) and out.dtype == jnp.float32

  # Also exercise the row-tiled fallback path (v7x / large-NP) and cross-check.
  out_tiled = forward(init_ent_emb, node_id, src, dst, rel, norm, rel_emb,
                      layer_params, force_row_tiling=True, row_tile=128)
  jax.block_until_ready(out_tiled)
  assert out_tiled.shape == (N, H_DIM)
  assert jnp.allclose(out, out_tiled, rtol=2e-2, atol=1e-3)

  print("KERNEL_OK")
</pallas_src>

<mosaic_0001>
module attributes {stable_mosaic.version = 11 : i64} {
  func.func @_rgcn_fused_kernel(%arg0: i32, %arg1: memref<256x128xf32, #tpu.memory_space<vmem>>, %arg2: memref<256x256xbf16, #tpu.memory_space<vmem>>, %arg3: memref<256x128xf32, #tpu.memory_space<vmem>>, %arg4: memref<256x1xf32, #tpu.memory_space<vmem>>, %arg5: memref<1x384x128xbf16, #tpu.memory_space<vmem>>, %arg6: memref<256x128xf32, #tpu.memory_space<vmem>>) attributes {dimension_semantics = [#tpu.dimension_semantics<arbitrary>], iteration_bounds = array<i64: 2>, scalar_prefetch = 0 : i64, scratch_operands = 0 : i64, tpu.core_type = #tpu.core_type<tc>, window_params = [{pipeline_mode = #tpu.pipeline_mode<synchronous>, transform_indices = @transform_0, window_bounds = array<i64: 256, 128>}, {pipeline_mode = #tpu.pipeline_mode<synchronous>, transform_indices = @transform_1, window_bounds = array<i64: 256, 256>}, {pipeline_mode = #tpu.pipeline_mode<synchronous>, transform_indices = @transform_2, window_bounds = array<i64: 256, 128>}, {pipeline_mode = #tpu.pipeline_mode<synchronous>, transform_indices = @transform_3, window_bounds = array<i64: 256, 1>}, {transform_indices = @transform_4, window_bounds = array<i64: 1, 384, 128>}, {pipeline_mode = #tpu.pipeline_mode<synchronous>, transform_indices = @transform_5, window_bounds = array<i64: 256, 128>}]} {
    %c0_i32 = arith.constant 0 : i32
    %0 = arith.cmpi eq, %arg0, %c0_i32 : i32
    %1 = arith.extui %0 : i1 to i32
    %c0_i32_0 = arith.constant 0 : i32
    %2 = arith.cmpi ne, %1, %c0_i32_0 : i32
    scf.if %2 {
      %c0_16 = arith.constant 0 : index
      %c0_17 = arith.constant 0 : index
      %24 = vector.load %arg1[%c0_16, %c0_17] : memref<256x128xf32, #tpu.memory_space<vmem>>, vector<256x128xf32>
      %c0_18 = arith.constant 0 : index
      %c0_19 = arith.constant 0 : index
      %25 = vector.load %arg6[%c0_18, %c0_19] : memref<256x128xf32, #tpu.memory_space<vmem>>, vector<256x128xf32>
      tpu.vector_store %arg6[%c0_18, %c0_19], %24 {strides = array<i32>} : memref<256x128xf32, #tpu.memory_space<vmem>>, vector<256x128xf32>,
    } else {
    }
    %c0 = arith.constant 0 : index
    %c0_1 = arith.constant 0 : index
    %3 = vector.load %arg6[%c0, %c0_1] : memref<256x128xf32, #tpu.memory_space<vmem>>, vector<256x128xf32>
    %4 = arith.truncf %3 : vector<256x128xf32> to vector<256x128xbf16>
    %c0_2 = arith.constant 0 : index
    %c0_3 = arith.constant 0 : index
    %5 = vector.load %arg2[%c0_2, %c0_3] : memref<256x256xbf16, #tpu.memory_space<vmem>>, vector<256x256xbf16>
    %cst = arith.constant dense<0.000000e+00> : vector<256x128xf32>
    %6 = tpu.matmul %5, %4, %cst {dimension_numbers = #tpu.dot_dimension_numbers<[1], [0], [0], [1], [0, 0, 1, 1], [], []>} : vector<256x256xbf16>, vector<256x128xbf16>, vector<256x128xf32> -> vector<256x128xf32>
    %c0_4 = arith.constant 0 : index
    %c0_5 = arith.constant 0 : index
    %7 = vector.load %arg3[%c0_4, %c0_5] : memref<256x128xf32, #tpu.memory_space<vmem>>, vector<256x128xf32>
    %8 = arith.addf %6, %7 : vector<256x128xf32>
    %9 = arith.truncf %8 : vector<256x128xf32> to vector<256x128xbf16>
    %c0_6 = arith.constant 0 : index
    %c0_7 = arith.constant 0 : index
    %10 = vector.load %arg4[%c0_6, %c0_7] : memref<256x1xf32, #tpu.memory_space<vmem>>, vector<256x1xf32>
    %11 = arith.truncf %10 : vector<256x1xf32> to vector<256x1xbf16>
    %12 = vector.broadcast %11 : vector<256x1xbf16> to vector<256x128xbf16>
    %13 = arith.mulf %4, %12 : vector<256x128xbf16>
    %14 = tpu.concatenate %9, %4, %13 in 1 : vector<256x128xbf16>, vector<256x128xbf16>, vector<256x128xbf16> -> vector<256x384xbf16>
    %c0_8 = arith.constant 0 : index
    %c0_9 = arith.constant 0 : index
    %c0_10 = arith.constant 0 : index
    %15 = vector.load %arg5[%c0_8, %c0_9, %c0_10] : memref<1x384x128xbf16, #tpu.memory_space<vmem>>, vector<1x384x128xbf16>
    %16 = vector.shape_cast %15 : vector<1x384x128xbf16> to vector<384x128xbf16>
    %cst_11 = arith.constant dense<0.000000e+00> : vector<256x128xf32>
    %17 = tpu.matmul %14, %16, %cst_11 {dimension_numbers = #tpu.dot_dimension_numbers<[1], [0], [0], [1], [0, 0, 1, 1], [], []>} : vector<256x384xbf16>, vector<384x128xbf16>, vector<256x128xf32> -> vector<256x128xf32>
    %cst_12 = arith.constant 0.000000e+00 : f32
    %18 = vector.broadcast %cst_12 : f32 to vector<256x128xf32>
    %19 = arith.cmpf oge, %17, %18 : vector<256x128xf32>
    %cst_13 = arith.constant 0.229166672 : f32
    %20 = vector.broadcast %cst_13 : f32 to vector<256x128xf32>
    %21 = arith.mulf %17, %20 : vector<256x128xf32>
    %22 = arith.select %19, %17, %21 : vector<256x128xi1>, vector<256x128xf32>
    %c0_14 = arith.constant 0 : index
    %c0_15 = arith.constant 0 : index
    %23 = vector.load %arg6[%c0_14, %c0_15] : memref<256x128xf32, #tpu.memory_space<vmem>>, vector<256x128xf32>
    tpu.vector_store %arg6[%c0_14, %c0_15], %22 {strides = array<i32>} : memref<256x128xf32, #tpu.memory_space<vmem>>, vector<256x128xf32>,
    return
  }
  func.func @transform_0(%arg0: i32) -> (i32, i32) {
    %c0_i32 = arith.constant 0 : i32
    %c0_i32_0 = arith.constant 0 : i32
    %c0_i32_1 = arith.constant 0 : i32
    return %c0_i32, %c0_i32_0 : i32, i32
  }
  func.func @transform_1(%arg0: i32) -> (i32, i32) {
    %c0_i32 = arith.constant 0 : i32
    %c0_i32_0 = arith.constant 0 : i32
    %c0_i32_1 = arith.constant 0 : i32
    return %c0_i32, %c0_i32_0 : i32, i32
  }
  func.func @transform_2(%arg0: i32) -> (i32, i32) {
    %c0_i32 = arith.constant 0 : i32
    %c0_i32_0 = arith.constant 0 : i32
    %c0_i32_1 = arith.constant 0 : i32
    return %c0_i32, %c0_i32_0 : i32, i32
  }
  func.func @transform_3(%arg0: i32) -> (i32, i32) {
    %c0_i32 = arith.constant 0 : i32
    %c0_i32_0 = arith.constant 0 : i32
    %c0_i32_1 = arith.constant 0 : i32
    return %c0_i32, %c0_i32_0 : i32, i32
  }
  func.func @transform_4(%arg0: i32) -> (i32, i32, i32) {
    %c0_i32 = arith.constant 0 : i32
    %c0_i32_0 = arith.constant 0 : i32
    %c0_i32_1 = arith.constant 0 : i32
    return %arg0, %c0_i32, %c0_i32_0 : i32, i32, i32
  }
  func.func @transform_5(%arg0: i32) -> (i32, i32) {
    %c0_i32 = arith.constant 0 : i32
    %c0_i32_0 = arith.constant 0 : i32
    %c0_i32_1 = arith.constant 0 : i32
    return %c0_i32, %c0_i32_0 : i32, i32
  }
}

</mosaic_0001>

<bundles_post_ra>
// kernel: rgcn_cell_forward.1
= control target key start
LH: loop header
LB: loop body
LE: loop exit
PB: predicated region body
PF: predicated region fallthrough
CT: control target
= control target key end

     0   :  { %s2525_s18 = smov 0   ;;  %s3742_s0 = inlined_call_operand.vmem [shape: f32[256,128], index: 0, kind: input, shape index: {}]   ;;  %s3743_s1 = inlined_call_operand.vmem [shape: bf16[256,256], index: 1, kind: input, shape index: {}]   ;;  %s3744_s2 = inlined_call_operand.vmem [shape: f32[256,128], index: 2, kind: input, shape index: {}]   ;;  %s3745_s3 = inlined_call_operand.vmem [shape: f32[256,1], index: 3, kind: input, shape index: {}]   ;;  %s3746_s4 = inlined_call_operand.vmem [shape: bf16[2,384,128], index: 4, kind: input, shape index: {}]   ;;  %s3747_s5 = inlined_call_operand.vmem [shape: f32[256,128], index: 5, kind: output, shape index: {}]  }
   0x1 LB: > { %s2159_s19 = sadd.s32 4294967295, %s2491_s18   ;;  %p2162_p0 = scmp.ge.s32.totalorder %s2491_s18, 1  ;;  %s2491_s18 = sphi %s2525_s18, %s15_s18  }
   0x2   : > { %p182_p1 = scmp.lt.s32.totalorder %s2491_s18, 3 }
   0x4   : > { %p183_p2 = pnand %p2162_p0, %p182_p1 }
   0x6   : > { %186 = sbr.rel (%p183_p2) target bundleno = 684 (0x2ac), region = 40 }
   0xb   : > { %p205_p3 = scmp.lt.s32.totalorder %s2159_s19, 1  ;;  %p2164_p4 = scmp.ne.s32.totalorder %s2159_s19, 0 }
   0xd   : > { %s206_s20 = scalar_select %p205_p3, %s2159_s19, 1 }
   0xe   : > { %213 = sbr.rel (%p2164_p4) target bundleno = 52 (0x34), region = 44 }
   0xf   : > { %s2471_s21 = smul.u32 192, %s206_s20 }
  0x11   : > { %s2536_s24 = scalar_lea.vmem %s3746_s4, %s2471_s21 }
  0x13   : > { %v214_v0 = vld [vmem:[%s3742_s0] sm:$0xff]  ;;  %v215_v1 = vld [vmem:[%s3742_s0 + $0x8] sm:$0xff]  ;;  %v216_v2 = vld [vmem:[%s3742_s0 + $0x10] sm:$0xff] }
  0x14   : > { %246 = vst [vmem:[%s3747_s5] sm:$0xff] %v214_v0  ;;  %v217_v3 = vld [vmem:[%s3742_s0 + $0x18] sm:$0xff]  ;;  %v218_v4 = vld [vmem:[%s3742_s0 + $0x20] sm:$0xff]  ;;  %v219_v5 = vld [vmem:[%s3742_s0 + $0x28] sm:$0xff] }
  0x15   : > { %247 = vst [vmem:[%s3747_s5 + $0x8] sm:$0xff] %v215_v1  ;;  %v220_v6 = vld [vmem:[%s3742_s0 + $0x30] sm:$0xff]  ;;  %v221_v7 = vld [vmem:[%s3742_s0 + $0x38] sm:$0xff]  ;;  %v222_v8 = vld [vmem:[%s3742_s0 + $0x40] sm:$0xff] }
  0x16   : > { %248 = vst [vmem:[%s3747_s5 + $0x10] sm:$0xff] %v216_v2  ;;  %v223_v9 = vld [vmem:[%s3742_s0 + $0x48] sm:$0xff]  ;;  %v224_v10 = vld [vmem:[%s3742_s0 + $0x50] sm:$0xff]  ;;  %v225_v11 = vld [vmem:[%s3742_s0 + $0x58] sm:$0xff] }
  0x17   : > { %249 = vst [vmem:[%s3747_s5 + $0x18] sm:$0xff] %v217_v3  ;;  %v226_v12 = vld [vmem:[%s3742_s0 + $0x60] sm:$0xff]  ;;  %v227_v13 = vld [vmem:[%s3742_s0 + $0x68] sm:$0xff]  ;;  %v228_v14 = vld [vmem:[%s3742_s0 + $0x70] sm:$0xff] }
  0x18   : > { %250 = vst [vmem:[%s3747_s5 + $0x20] sm:$0xff] %v218_v4  ;;  %v229_v15 = vld [vmem:[%s3742_s0 + $0x78] sm:$0xff]  ;;  %v230_v16 = vld [vmem:[%s3742_s0 + $0x80] sm:$0xff]  ;;  %v231_v17 = vld [vmem:[%s3742_s0 + $0x88] sm:$0xff] }
  0x19   : > { %251 = vst [vmem:[%s3747_s5 + $0x28] sm:$0xff] %v219_v5  ;;  %v232_v18 = vld [vmem:[%s3742_s0 + $0x90] sm:$0xff]  ;;  %v233_v19 = vld [vmem:[%s3742_s0 + $0x98] sm:$0xff]  ;;  %v234_v20 = vld [vmem:[%s3742_s0 + $0xa0] sm:$0xff] }
  0x1a   : > { %252 = vst [vmem:[%s3747_s5 + $0x30] sm:$0xff] %v220_v6  ;;  %v235_v21 = vld [vmem:[%s3742_s0 + $0xa8] sm:$0xff]  ;;  %v236_v22 = vld [vmem:[%s3742_s0 + $0xb0] sm:$0xff]  ;;  %v237_v23 = vld [vmem:[%s3742_s0 + $0xb8] sm:$0xff] }
  0x1b   : > { %253 = vst [vmem:[%s3747_s5 + $0x38] sm:$0xff] %v221_v7  ;;  %v238_v24 = vld [vmem:[%s3742_s0 + $0xc0] sm:$0xff]  ;;  %v239_v25 = vld [vmem:[%s3742_s0 + $0xc8] sm:$0xff]  ;;  %v240_v26 = vld [vmem:[%s3742_s0 + $0xd0] sm:$0xff] }
  0x1c   : > { %254 = vst [vmem:[%s3747_s5 + $0x40] sm:$0xff] %v222_v8  ;;  %v241_v27 = vld [vmem:[%s3742_s0 + $0xd8] sm:$0xff]  ;;  %v242_v28 = vld [vmem:[%s3742_s0 + $0xe0] sm:$0xff]  ;;  %v243_v29 = vld [vmem:[%s3742_s0 + $0xe8] sm:$0xff] }
  0x1d   : > { %255 = vst [vmem:[%s3747_s5 + $0x48] sm:$0xff] %v223_v9  ;;  %v244_v30 = vld [vmem:[%s3742_s0 + $0xf0] sm:$0xff]  ;;  %v245_v31 = vld [vmem:[%s3742_s0 + $0xf8] sm:$0xff] }
  0x1e   : > { %256 = vst [vmem:[%s3747_s5 + $0x50] sm:$0xff] %v224_v10 }
  0x1f   : > { %257 = vst [vmem:[%s3747_s5 + $0x58] sm:$0xff] %v225_v11 }
  0x20   : > { %258 = vst [vmem:[%s3747_s5 + $0x60] sm:$0xff] %v226_v12 }
  0x21   : > { %259 = vst [vmem:[%s3747_s5 + $0x68] sm:$0xff] %v227_v13 }
  0x22   : > { %260 = vst [vmem:[%s3747_s5 + $0x70] sm:$0xff] %v228_v14 }
  0x23   : > { %261 = vst [vmem:[%s3747_s5 + $0x78] sm:$0xff] %v229_v15 }
  0x24   : > { %262 = vst [vmem:[%s3747_s5 + $0x80] sm:$0xff] %v230_v16 }
  0x25   : > { %263 = vst [vmem:[%s3747_s5 + $0x88] sm:$0xff] %v231_v17 }
  0x26   : > { %264 = vst [vmem:[%s3747_s5 + $0x90] sm:$0xff] %v232_v18 }
  0x27   : > { %265 = vst [vmem:[%s3747_s5 + $0x98] sm:$0xff] %v233_v19 }
  0x28   : > { %266 = vst [vmem:[%s3747_s5 + $0xa0] sm:$0xff] %v234_v20 }
  0x29   : > { %267 = vst [vmem:[%s3747_s5 + $0xa8] sm:$0xff] %v235_v21 }
  0x2a   : > { %268 = vst [vmem:[%s3747_s5 + $0xb0] sm:$0xff] %v236_v22 }
  0x2b   : > { %269 = vst [vmem:[%s3747_s5 + $0xb8] sm:$0xff] %v237_v23 }
  0x2c   : > { %270 = vst [vmem:[%s3747_s5 + $0xc0] sm:$0xff] %v238_v24 }
  0x2d   : > { %271 = vst [vmem:[%s3747_s5 + $0xc8] sm:$0xff] %v239_v25 }
  0x2e   : > { %272 = vst [vmem:[%s3747_s5 + $0xd0] sm:$0xff] %v240_v26 }
  0x2f   : > { %273 = vst [vmem:[%s3747_s5 + $0xd8] sm:$0xff] %v241_v27 }
  0x30   : > { %274 = vst [vmem:[%s3747_s5 + $0xe0] sm:$0xff] %v242_v28 }
  0x31   : > { %275 = vst [vmem:[%s3747_s5 + $0xe8] sm:$0xff] %v243_v29 }
  0x32   : > { %276 = vst [vmem:[%s3747_s5 + $0xf0] sm:$0xff] %v244_v30 }
  0x33   : > { %277 = vst [vmem:[%s3747_s5 + $0xf8] sm:$0xff] %v245_v31 }
  0x34 PF: > { %v872_v32 = vld [vmem:[%s3745_s3] sm:$0xff]  ;;  %v292_v33 = vld [vmem:[%s3747_s5 + $0x70] sm:$0xff]  ;;  %v293_v34 = vld [vmem:[%s3747_s5 + $0x78] sm:$0xff]  ;;  %v2493_v35 = vmov 0  }
  0x35   : > { %2482 = vset.pattern.permute.xlu0 %v2493_v35  ;;  %v904_v36 = vpack.c.bf16 %v872_v32, %v872_v32  ;;  %v2739_v37 = vpack.c.bf16 %v292_v33, %v292_v33  ;;  %v2741_v38 = vpack.c.bf16 %v293_v34, %v293_v34  ;;  %v290_v39 = vld [vmem:[%s3747_s5 + $0x60] sm:$0xff]  ;;  %v291_v40 = vld [vmem:[%s3747_s5 + $0x68] sm:$0xff]  ;;  %2483 = vset.pattern.permute.xlu1 %v2493_v35  ;;  %v288_v43 = vld [vmem:[%s3747_s5 + $0x50] sm:$0xff] }
  0x36   : > { %v2749_v41 = vpack.c.bf16 %v290_v39, %v290_v39  ;;  %v2751_v42 = vpack.c.bf16 %v291_v40, %v291_v40  ;;  %v289_v44 = vld [vmem:[%s3747_s5 + $0x58] sm:$0xff]  ;;  %v874_v45 = vld [vmem:[%s3745_s3 + $0x10] sm:$0xff]  ;;  %2484 = vset.pattern.permute.xlu2 %v2493_v35  ;;  %v873_v48 = vld [vmem:[%s3745_s3 + $0x8] sm:$0xff]  ;;  %v2767_v49 = vpack.c.bf16 %v288_v43, %v288_v43 }
  0x37   : > { %938 = vperm.xlu0 %2482, %v904_v36   ;;  %v612_v46 = vunpack.c.l.b16 %v2739_v37  ;;  %v613_v47 = vunpack.c.l.b16 %v2741_v38  ;;  %v2769_v50 = vpack.c.bf16 %v289_v44, %v289_v44  ;;  %v286_v51 = vld [vmem:[%s3747_s5 + $0x40] sm:$0xff]  ;;  %v906_v54 = vpack.c.bf16 %v874_v45, %v874_v45  ;;  %v287_v55 = vld [vmem:[%s3747_s5 + $0x48] sm:$0xff]  ;;  %v284_v63 = vld [vmem:[%s3747_s5 + $0x30] sm:$0xff] }
  0x38   : > { %v610_v52 = vunpack.c.l.b16 %v2749_v41  ;;  %v611_v53 = vunpack.c.l.b16 %v2751_v42  ;;  %v905_v57 = vpack.c.bf16 %v873_v48, %v873_v48  ;;  %v2781_v58 = vpack.c.bf16 %v286_v51, %v286_v51  ;;  %v875_v0 = vld [vmem:[%s3745_s3 + $0x18] sm:$0xff]  ;;  %v282_v8 = vld [vmem:[%s3747_s5 + $0x20] sm:$0xff]  ;;  %v283_v9 = vld [vmem:[%s3747_s5 + $0x28] sm:$0xff] }
  0x39   : > { %v2779_v56 = vpack.c.b16 %v613_v47, %v612_v46  ;;  %956 = vperm.xlu1 %2483, %v906_v54   ;;  %v608_v60 = vunpack.c.l.b16 %v2767_v49  ;;  %v609_v61 = vunpack.c.l.b16 %v2769_v50  ;;  %v2788_v62 = vpack.c.bf16 %v287_v55, %v287_v55  ;;  %v285_v1 = vld [vmem:[%s3747_s5 + $0x38] sm:$0xff]  ;;  %v878_v10 = vld [vmem:[%s3745_s3 + $0x30] sm:$0xff]  ;;  %v278_v26 = vld [vmem:[%s3747_s5] sm:$0xff] }
  0x3a   : > { %v2784_v59 = vpack.c.b16 %v611_v53, %v610_v52  ;;  %v2802_v2 = vpack.c.bf16 %v284_v63, %v284_v63  ;;  %v907_v3 = vpack.c.bf16 %v875_v0, %v875_v0  ;;  %v606_v5 = vunpack.c.l.b16 %v2781_v58  ;;  %v280_v16 = vld [vmem:[%s3747_s5 + $0x10] sm:$0xff]  ;;  %v879_v17 = vld [vmem:[%s3745_s3 + $0x38] sm:$0xff]  ;;  %v279_v27 = vld [vmem:[%s3747_s5 + $0x8] sm:$0xff] }
  0x3b   : > { %2447 = vmatpush.bf16.msra.mxu1 %v2779_v56  ;;  %662 = vmatpush.bf16.msra.mxu0 %v2779_v56  ;;  %v2805_v4 = vpack.c.b16 %v609_v61, %v608_v60  ;;  %v607_v6 = vunpack.c.l.b16 %v2788_v62  ;;  %v2809_v7 = vpack.c.bf16 %v285_v1, %v285_v1  ;;  %v2824_v12 = vpack.c.bf16 %v282_v8, %v282_v8  ;;  %v281_v19 = vld [vmem:[%s3747_s5 + $0x18] sm:$0xff]  ;;  %v308_v28 = vld [vmem:[%s3747_s5 + $0xf0] sm:$0xff]  ;;  %v876_v32 = vld [vmem:[%s3745_s3 + $0x20] sm:$0xff] }
  0x3c   : > { %2448 = vmatpush.bf16.msra.mxu2 %v2779_v56  ;;  %2449 = vmatpush.bf16.msra.mxu3 %v2779_v56  ;;  %v604_v11 = vunpack.c.l.b16 %v2802_v2  ;;  %v2830_v15 = vpack.c.bf16 %v283_v9, %v283_v9  ;;  %v910_v18 = vpack.c.bf16 %v878_v10, %v878_v10  ;;  %v2844_v20 = vpack.c.bf16 %v280_v16, %v280_v16  ;;  %v309_v29 = vld [vmem:[%s3747_s5 + $0xf8] sm:$0xff]  ;;  %v882_v39 = vld [vmem:[%s3745_s3 + $0x50] sm:$0xff]  ;;  %v881_v40 = vld [vmem:[%s3745_s3 + $0x48] sm:$0xff] }
  0x3d   : > { %v2827_v13 = vpack.c.b16 %v607_v6, %v606_v5  ;;  %v605_v14 = vunpack.c.l.b16 %v2809_v7  ;;  %v911_v21 = vpack.c.bf16 %v879_v17, %v879_v17  ;;  %v602_v23 = vunpack.c.l.b16 %v2824_v12  ;;  %v306_v46 = vld [vmem:[%s3747_s5 + $0xe0] sm:$0xff]  ;;  %v307_v47 = vld [vmem:[%s3747_s5 + $0xe8] sm:$0xff]  ;;  %v304_v63 = vld [vmem:[%s3747_s5 + $0xd0] sm:$0xff] }
  0x3e   : > { %v603_v24 = vunpack.c.l.b16 %v2830_v15  ;;  %v2851_v25 = vpack.c.bf16 %v281_v19, %v281_v19  ;;  %v600_v30 = vunpack.c.l.b16 %v2844_v20  ;;  %v2869_v31 = vpack.c.bf16 %v278_v26, %v278_v26  ;;  %v877_v51 = vld [vmem:[%s3745_s3 + $0x28] sm:$0xff]  ;;  %v305_v0 = vld [vmem:[%s3747_s5 + $0xd8] sm:$0xff]  ;;  %v884_v1 = vld [vmem:[%s3745_s3 + $0x60] sm:$0xff] }
  0x3f   : > { %947 = vperm.xlu0 %2482, %v905_v57   ;;  %2450 = vmatpush.bf16.msra.mxu1 %v2784_v59  ;;  %v2847_v22 = vpack.c.b16 %v605_v14, %v604_v11  ;;  %v2878_v35 = vpack.c.bf16 %v279_v27, %v279_v27  ;;  %v908_v36 = vpack.c.bf16 %v876_v32, %v876_v32  ;;  %v2199_v6 = vld [vmem:[%s3743_s1 + $0x40] sm:$0xf]  ;;  %v2400_v8 = vld [vmem:[%s3743_s1 + $0x44] sm:$0xf0]  ;;  %v300_v32 = vld [vmem:[%s3747_s5 + $0xb0] sm:$0xff] }
  0x40   : > { %663 = vmatpush.bf16.msra.mxu0 %v2784_v59  ;;  %2451 = vmatpush.bf16.msra.mxu2 %v2784_v59  ;;  %v2875_v33 = vpack.c.b16 %v603_v24, %v602_v23  ;;  %v601_v34 = vunpack.c.l.b16 %v2851_v25  ;;  %v2886_v43 = vpack.c.bf16 %v308_v28, %v308_v28  ;;  %v2888_v44 = vpack.c.bf16 %v309_v29, %v309_v29  ;;  %v885_v11 = vld [vmem:[%s3745_s3 + $0x68] sm:$0xff]  ;;  %v302_v19 = vld [vmem:[%s3747_s5 + $0xc0] sm:$0xff] }
  0x41   : > { %2452 = vmatpush.bf16.msra.mxu3 %v2784_v59  ;;  %965 = vperm.xlu1 %2483, %v907_v3   ;;  %v913_v45 = vpack.c.bf16 %v881_v40, %v881_v40  ;;  %v914_v48 = vpack.c.bf16 %v882_v39, %v882_v39  ;;  %v598_v53 = vunpack.c.l.b16 %v2869_v31  ;;  %v599_v54 = vunpack.c.l.b16 %v2878_v35 }
  0x42   : > { %974 = vperm.xlu2 %2484, %v908_v36   ;;  %v2903_v52 = vpack.c.b16 %v601_v34, %v600_v30  ;;  %v628_v55 = vunpack.c.l.b16 %v2886_v43  ;;  %v629_v57 = vunpack.c.l.b16 %v2888_v44  ;;  %v2909_v60 = vpack.c.bf16 %v306_v46, %v306_v46  ;;  %v301_v34 = vld [vmem:[%s3747_s5 + $0xb8] sm:$0xff]  ;;  %v2167_v36 = vld [vmem:[%s3743_s1] sm:$0xf]  ;;  %v2392_v46 = vld [vmem:[%s3743_s1 + $0x4] sm:$0xf0] }
  0x43   : > { %2453 = vmatpush.bf16.msra.mxu1 %v2805_v4  ;;  %v2911_v61 = vpack.c.bf16 %v307_v47, %v307_v47  ;;  %v909_v3 = vpack.c.bf16 %v877_v51, %v877_v51  ;;  %v2926_v5 = vpack.c.b16 %v599_v54, %v598_v53  ;;  %v2934_v9 = vpack.c.bf16 %v304_v63, %v304_v63  ;;  %v888_v47 = vld [vmem:[%s3745_s3 + $0x80] sm:$0xff]  ;;  %v299_v63 = vld [vmem:[%s3747_s5 + $0xa8] sm:$0xff] }
  0x44   : > { %664 = vmatpush.bf16.msra.mxu0 %v2805_v4  ;;  %2454 = vmatpush.bf16.msra.mxu2 %v2805_v4  ;;  %v2936_v10 = vpack.c.bf16 %v305_v0, %v305_v0  ;;  %v916_v14 = vpack.c.bf16 %v884_v1, %v884_v1  ;;  %v2941_v16 = vpack.c.b16 %v629_v57, %v628_v55  ;;  %v626_v17 = vunpack.c.l.b16 %v2909_v60  ;;  %v298_v57 = vld [vmem:[%s3747_s5 + $0xa0] sm:$0xff] }
  0x45   : > { %2455 = vmatpush.bf16.msra.mxu3 %v2805_v4  ;;  %v2200_v23 = vor.u32 %v2400_v8, %v2199_v6  ;;  %v917_v24 = vpack.c.bf16 %v885_v11, %v885_v11  ;;  %v624_v26 = vunpack.c.l.b16 %v2934_v9  ;;  %v2957_v28 = vpack.c.bf16 %v302_v19, %v302_v19  ;;  %v891_v19 = vld [vmem:[%s3745_s3 + $0x98] sm:$0xff] }
  0x46   : > { %3752 = vst [vmem:[#allocation2_spill] sm:$0xff] %v2941_v16  ;;  %v625_v27 = vunpack.c.l.b16 %v2936_v10  ;;  %v2990_v51 = vpack.c.bf16 %v300_v32, %v300_v32  ;;  %v2992_v53 = vpack.c.bf16 %v301_v34, %v301_v34  ;;  %v2168_v54 = vor.u32 %v2392_v46, %v2167_v36  ;;  %v296_v36 = vld [vmem:[%s3747_s5 + $0x90] sm:$0xff] }
  0x47   : > { %2456 = vmatpush.bf16.msra.mxu1 %v2827_v13  ;;  %992 = vperm.xlu0 %2482, %v910_v18   ;;  %v627_v18 = vunpack.c.l.b16 %v2911_v61  ;;  %v622_v40 = vunpack.c.l.b16 %v2957_v28  ;;  %v920_v0 = vpack.c.bf16 %v888_v47, %v888_v47  ;;  %v3005_v8 = vpack.c.bf16 %v298_v57, %v298_v57 }
  0x48   : > { %665 = vmatpush.bf16.msra.mxu0 %v2827_v13  ;;  %2457 = vmatpush.bf16.msra.mxu2 %v2827_v13  ;;  %v2976_v39 = vpack.c.b16 %v625_v27, %v624_v26  ;;  %v621_v6 = vunpack.c.l.b16 %v2992_v53  ;;  %v3007_v11 = vpack.c.bf16 %v299_v63, %v299_v63  ;;  %v923_v32 = vpack.c.bf16 %v891_v19, %v891_v19 }
  0x49   : > { %2458 = vmatpush.bf16.msra.mxu3 %v2827_v13  ;;  %1001 = vperm.xlu1 %2483, %v911_v21   ;;  %v303_v21 = vld [vmem:[%s3747_s5 + $0xc8] sm:$0xff]  ;;  %v2962_v30 = vpack.c.b16 %v627_v18, %v626_v17  ;;  %v2207_v17 = vld [vmem:[%s3743_s1 + $0x50] sm:$0xf]  ;;  %v2402_v18 = vld [vmem:[%s3743_s1 + $0x54] sm:$0xf0]  ;;  %v3038_v46 = vpack.c.bf16 %v296_v36, %v296_v36 }
  0x4a   : > { %983 = vperm.xlu2 %2484, %v909_v3   ;;  %v2959_v29 = vpack.c.bf16 %v303_v21, %v303_v21  ;;  %3754 = vst [vmem:[#allocation4_spill] sm:$0xff] %v2976_v39  ;;  %v620_v3 = vunpack.c.l.b16 %v2990_v51  ;;  %v619_v26 = vunpack.c.l.b16 %v3007_v11  ;;  %v2208_v27 = vor.u32 %v2402_v18, %v2207_v17 }
  0x4b   : > { %2459 = vmatpush.bf16.msra.mxu1 %v2847_v22  ;;  %3753 = vst [vmem:[#allocation3_spill] sm:$0xff] %v2962_v30 }
  0x4c   : > { %666 = vmatpush.bf16.msra.mxu0 %v2847_v22  ;;  %2460 = vmatpush.bf16.msra.mxu2 %v2847_v22 }
  0x4d   : > { %2461 = vmatpush.bf16.msra.mxu3 %v2847_v22 }
  0x4f   : > { %2462 = vmatpush.bf16.msra.mxu1 %v2875_v33  ;;  %1019 = vperm.xlu0 %2482, %v913_v45   ;;  %v623_v45 = vunpack.c.l.b16 %v2959_v29 }
  0x50   : > { %667 = vmatpush.bf16.msra.mxu0 %v2875_v33  ;;  %2463 = vmatpush.bf16.msra.mxu2 %v2875_v33 }
  0x51   : > { %2464 = vmatpush.bf16.msra.mxu3 %v2875_v33  ;;  %1028 = vperm.xlu1 %2483, %v914_v48   ;;  %v887_v48 = vld [vmem:[%s3745_s3 + $0x78] sm:$0xff]  ;;  %v3000_v1 = vpack.c.b16 %v623_v45, %v622_v40  ;;  %v2175_v45 = vld [vmem:[%s3743_s1 + $0x10] sm:$0xf] }
  0x52   : > { %v919_v55 = vpack.c.bf16 %v887_v48, %v887_v48  ;;  %v297_v40 = vld [vmem:[%s3747_s5 + $0x98] sm:$0xff] }
  0x53   : > { %2465 = vmatpush.bf16.msra.mxu1 %v2903_v52  ;;  %3755 = vst [vmem:[#allocation5_spill] sm:$0xff] %v3000_v1  ;;  %v3040_v47 = vpack.c.bf16 %v297_v40, %v297_v40  ;;  %v2394_v48 = vld [vmem:[%s3743_s1 + $0x14] sm:$0xf0]  ;;  %v896_v40 = vld [vmem:[%s3745_s3 + $0xc0] sm:$0xff] }
  0x54   : > { %668 = vmatpush.bf16.msra.mxu0 %v2903_v52  ;;  %2466 = vmatpush.bf16.msra.mxu2 %v2903_v52  ;;  %v2176_v57 = vor.u32 %v2394_v48, %v2175_v45 }
  0x55   : > { %2467 = vmatpush.bf16.msra.mxu3 %v2903_v52  ;;  %v617_v17 = vunpack.c.l.b16 %v3040_v47 }
  0x57   : > { %2468 = vmatpush.bf16.msra.mxu1 %v2926_v5  ;;  %1046 = vperm.xlu0 %2482, %v916_v14   ;;  %v890_v14 = vld [vmem:[%s3745_s3 + $0x90] sm:$0xff] }
  0x58   : > { %669 = vmatpush.bf16.msra.mxu0 %v2926_v5  ;;  %2469 = vmatpush.bf16.msra.mxu2 %v2926_v5  ;;  %v922_v21 = vpack.c.bf16 %v890_v14, %v890_v14  ;;  %v616_v14 = vunpack.c.l.b16 %v3038_v46 }
  0x59   : > { %2470 = vmatpush.bf16.msra.mxu3 %v2926_v5  ;;  %1055 = vperm.xlu1 %2483, %v917_v24   ;;  %v618_v24 = vunpack.c.l.b16 %v3005_v8 }
  0x5a   : > { %690 = vmatmul.bf16.vlgmr.msra.gmra.mxu1 %v2200_v23  ;;  %v3022_v23 = vpack.c.b16 %v621_v6, %v620_v3  ;;  %v294_v3 = vld [vmem:[%s3747_s5 + $0x80] sm:$0xff]  ;;  %v295_v6 = vld [vmem:[%s3747_s5 + $0x88] sm:$0xff] }
  0x5b   : > { %751 = vmatpush.bf16.msrb.mxu1 %v2941_v16  ;;  %670 = vmatmul.bf16.vlgmr.msra.gmra.mxu0 %v2168_v54  ;;  %v3027_v34 = vpack.c.b16 %v619_v26, %v618_v24  ;;  %v880_v54 = vld [vmem:[%s3745_s3 + $0x40] sm:$0xff]  ;;  %v3063_v19 = vpack.c.bf16 %v294_v3, %v294_v3  ;;  %v3065_v24 = vpack.c.bf16 %v295_v6, %v295_v6 }
  0x5c   : > { %v912_v63 = vpack.c.bf16 %v880_v54, %v880_v54  ;;  %v3067_v26 = vpack.c.b16 %v617_v17, %v616_v14  ;;  %v2215_v54 = vld [vmem:[%s3743_s1 + $0x60] sm:$0xf]  ;;  %v2396_v14 = vld [vmem:[%s3743_s1 + $0x24] sm:$0xf0]  ;;  %v2446_v17 = vld [vmem:[%s2536_s24 + $0xb8] sm:$0xff] }
  0x5d   : > { %v615_v36 = vunpack.c.l.b16 %v3065_v24  ;;  %v2183_v6 = vld [vmem:[%s3743_s1 + $0x20] sm:$0xf]  ;;  %1914 = vmatpush.bf16.msrb.mxu0 %v2446_v17 }
  0x5e   : > { %1010 = vperm.xlu2 %2484, %v912_v63   ;;  %v928_v63 = vpack.c.bf16 %v896_v40, %v896_v40 }
  0x5f   : > { %752 = vmatpush.bf16.msrb.mxu1 %v2962_v30  ;;  %1073 = vperm.xlu0 %2482, %v919_v55   ;;  %v894_v55 = vld [vmem:[%s3745_s3 + $0xb0] sm:$0xff] }
  0x61   : > { %1082 = vperm.xlu1 %2483, %v920_v0   ;;  %v893_v0 = vld [vmem:[%s3745_s3 + $0xa8] sm:$0xff] }
  0x62   : > { %v925_v18 = vpack.c.bf16 %v893_v0, %v893_v0 }
  0x63   : > { %753 = vmatpush.bf16.msrb.mxu1 %v2976_v39  ;;  %v1227_v39 = vunpack.c.l.bf16 %v2851_v25  ;;  %v2416_v25 = vld [vmem:[%s3743_s1 + $0xc4] sm:$0xf0] }
  0x67   : > { %754 = vmatpush.bf16.msrb.mxu1 %v3000_v1  ;;  %1100 = vperm.xlu0 %2482, %v922_v21   ;;  %v926_v21 = vpack.c.bf16 %v894_v55, %v894_v55  ;;  %v2404_v55 = vld [vmem:[%s3743_s1 + $0x64] sm:$0xf0] }
  0x68   : > { %v2216_v0 = vor.u32 %v2404_v55, %v2215_v54  ;;  %v889_v55 = vld [vmem:[%s3745_s3 + $0x88] sm:$0xff] }
  0x69   : > { %1109 = vperm.xlu1 %2483, %v923_v32   ;;  %v883_v32 = vld [vmem:[%s3745_s3 + $0x58] sm:$0xff] }
  0x6a   : > { %695 = vmatmul.bf16.gmra.mxu1 %v2208_v27  ;;  %v614_v27 = vunpack.c.l.b16 %v3063_v19  ;;  %v915_v48 = vpack.c.bf16 %v883_v32, %v883_v32  ;;  %v899_v32 = vld [vmem:[%s3745_s3 + $0xd8] sm:$0xff] }
  0x6b   : > { %755 = vmatpush.bf16.msrb.mxu1 %v3022_v23  ;;  %675 = vmatmul.bf16.gmra.mxu0 %v2176_v57  ;;  %v897_v57 = vld [vmem:[%s3745_s3 + $0xc8] sm:$0xff]  ;;  %v931_v40 = vpack.c.bf16 %v899_v32, %v899_v32  ;;  %v2191_v32 = vld [vmem:[%s3743_s1 + $0x30] sm:$0xf] }
  0x6c   : > { %v3078_v45 = vpack.c.b16 %v615_v36, %v614_v27  ;;  %1037 = vperm.xlu2 %2484, %v915_v48   ;;  %v929_v3 = vpack.c.bf16 %v897_v57, %v897_v57  ;;  %v900_v27 = vld [vmem:[%s3745_s3 + $0xe0] sm:$0xff]  ;;  %v2445_v48 = vld [vmem:[%s2536_s24 + $0xb0] sm:$0xff]  ;;  %v2444_v57 = vld [vmem:[%s2536_s24 + $0xa8] sm:$0xff] }
  0x6d   : > { %v932_v54 = vpack.c.bf16 %v900_v27, %v900_v27  ;;  %1915 = vmatpush.bf16.msrb.mxu0 %v2445_v48  ;;  %v2443_v27 = vld [vmem:[%s2536_s24 + $0xa0] sm:$0xff]  ;;  %v2442_v48 = vld [vmem:[%s2536_s24 + $0x98] sm:$0xff] }
  0x6f   : > { %756 = vmatpush.bf16.msrb.mxu1 %v3027_v34  ;;  %1127 = vperm.xlu0 %2482, %v925_v18   ;;  %v2184_v18 = vor.u32 %v2396_v14, %v2183_v6  ;;  %v2406_v6 = vld [vmem:[%s3743_s1 + $0x74] sm:$0xf0] }
  0x70   : > { %v903_v14 = vld [vmem:[%s3745_s3 + $0xf8] sm:$0xff] }
  0x71   : > { %1136 = vperm.xlu1 %2483, %v926_v21   ;;  %v886_v21 = vld [vmem:[%s3745_s3 + $0x70] sm:$0xff]  ;;  %1916 = vmatpush.bf16.msrb.mxu0 %v2444_v57 }
  0x72   : > { %v918_v36 = vpack.c.bf16 %v886_v21, %v886_v21  ;;  %v935_v21 = vpack.c.bf16 %v903_v14, %v903_v14  ;;  %v2441_v57 = vld [vmem:[%s2536_s24 + $0x90] sm:$0xff]  ;;  %v895_v14 = vld [vmem:[%s3745_s3 + $0xb8] sm:$0xff] }
  0x73   : > { %757 = vmatpush.bf16.msrb.mxu1 %v3067_v26 }
  0x74   : > { %1064 = vperm.xlu2 %2484, %v918_v36   ;;  %v2398_v36 = vld [vmem:[%s3743_s1 + $0x34] sm:$0xf0] }
  0x75   : > { %1917 = vmatpush.bf16.msrb.mxu0 %v2443_v27 }
  0x77   : > { %758 = vmatpush.bf16.msrb.mxu1 %v3078_v45  ;;  %1154 = vperm.xlu0 %2482, %v928_v63   ;;  %v902_v63 = vld [vmem:[%s3745_s3 + $0xf0] sm:$0xff] }
  0x78   : > { %v934_v17 = vpack.c.bf16 %v902_v63, %v902_v63  ;;  %v2391_v63 = vld [vmem:[%s3743_s1 + $0x4] sm:$0xf] }
  0x79   : > { %1163 = vperm.xlu1 %2483, %v929_v3   ;;  %v2223_v3 = vld [vmem:[%s3743_s1 + $0x70] sm:$0xf]  ;;  %1918 = vmatpush.bf16.msrb.mxu0 %v2442_v48  ;;  %v2177_v48 = vld [vmem:[%s3743_s1 + $0x18] sm:$0xf0] }
  0x7a   : > { %700 = vmatmul.bf16.gmra.mxu1 %v2216_v0  ;;  %v921_v0 = vpack.c.bf16 %v889_v55, %v889_v55 }
  0x7b   : > { %680 = vmatmul.bf16.gmra.mxu0 %v2184_v18  ;;  %v2224_v18 = vor.u32 %v2406_v6, %v2223_v3  ;;  %v2440_v3 = vld [vmem:[%s2536_s24 + $0x88] sm:$0xff] }
  0x7c   : > { %1091 = vperm.xlu2 %2484, %v921_v0   ;;  %v2169_v0 = vld [vmem:[%s3743_s1 + $0x8] sm:$0xf0] }
  0x7d   : > { %1919 = vmatpush.bf16.msrb.mxu0 %v2441_v57  ;;  %v2172_v6 = vor.u32 %v2391_v63, %v2169_v0  ;;  %v1224_v0 = vunpack.c.l.bf16 %v2869_v31  ;;  %v2185_v31 = vld [vmem:[%s3743_s1 + $0x28] sm:$0xf0] }
  0x7f   : > { %1181 = vperm.xlu0 %2482, %v931_v40   ;;  %v2192_v40 = vor.u32 %v2398_v36, %v2191_v32  ;;  %v2494_v32 = vmov 839922192  }
  0x80   : > { %v942_v36 = vunpack.c.l.s4 %v2494_v32  ;;  %v1225_v32 = vunpack.c.l.bf16 %v2878_v35  ;;  %v1226_v35 = vunpack.c.l.bf16 %v2844_v20  ;;  %v2263_v20 = vld [vmem:[%s3743_s1 + $0xc0] sm:$0xf] }
  0x81   : > { %1190 = vperm.xlu1 %2483, %v932_v54   ;;  %v892_v54 = vld [vmem:[%s3745_s3 + $0xa0] sm:$0xff]  ;;  %1920 = vmatpush.bf16.msrb.mxu0 %v2440_v3 }
  0x82   : > { %v924_v55 = vpack.c.bf16 %v892_v54, %v892_v54  ;;  %v3155_v54 = vunpack.c.0.s8 %v942_v36  ;;  %v2395_v36 = vld [vmem:[%s3743_s1 + $0x24] sm:$0xf] }
  0x84   : > { %1118 = vperm.xlu2 %2484, %v924_v55  }
  0x87   : > { %1208 = vperm.xlu0 %2482, %v934_v17   ;;  %v927_v17 = vpack.c.bf16 %v895_v14, %v895_v14  ;;  %v901_v14 = vld [vmem:[%s3745_s3 + $0xe8] sm:$0xff] }
  0x89   : > { %1217 = vperm.xlu1 %2483, %v935_v21   ;;  %v898_v21 = vld [vmem:[%s3745_s3 + $0xd0] sm:$0xff] }
  0x8a   : > { %705 = vmatmul.bf16.gmra.mxu1 %v2224_v18  ;;  %v2439_v18 = vld [vmem:[%s2536_s24 + $0x80] sm:$0xff]  ;;  %v930_v27 = vpack.c.bf16 %v898_v21, %v898_v21 }
  0x8b   : > { %685 = vmatmul.bf16.gmra.mxu0 %v2192_v40  ;;  %v2393_v40 = vld [vmem:[%s3743_s1 + $0x14] sm:$0xf] }
  0x8c   : > { %1145 = vperm.xlu2 %2484, %v927_v17   ;;  %1921 = vmatpush.bf16.msrb.mxu0 %v2439_v18  ;;  %v2180_v55 = vor.u32 %v2393_v40, %v2177_v48  ;;  %v933_v17 = vpack.c.bf16 %v901_v14, %v901_v14 }
  0x94   : > { %1172 = vperm.xlu2 %2484, %v930_v27  }
  0x9a   : > { %759 = vmatmul.bf16.vlgmr.msrb.gmra.mxu1 %v2172_v6 }
  0x9c   : > { %1199 = vperm.xlu2 %2484, %v933_v17  }
  0xa9   : > { %v939_v57 = vpop.permute.xlu0 %938 }
  0xaa   : > { %v944_v63 = vperm.slane %v939_v57, %v3155_v54  ;;  %764 = vmatmul.bf16.gmra.mxu1 %v2180_v55 }
  0xab   : > { %v957_v6 = vpop.permute.xlu1 %956 }
  0xac   : > { %v1256_v3 = vunpack.c.l.bf16 %v944_v63  ;;  %v962_v63 = vperm.slane %v957_v6, %v3155_v54  ;;  %v2408_v6 = vld [vmem:[%s3743_s1 + $0x84] sm:$0xf0] }
  0xae   : > { %v1288_v18 = vmul.f32 %v1256_v3, %v1224_v0  ;;  %v2188_v0 = vor.u32 %v2395_v36, %v2185_v31  ;;  %v1258_v30 = vunpack.c.l.bf16 %v962_v63 }
  0xb0   : > { %v1320_v40 = vpack.c.bf16 %v1288_v18, %v1288_v18 }
  0xb1   : > { %v948_v21 = vpop.permute.xlu0 %947 }
  0xb2   : > { %v953_v27 = vperm.slane %v948_v21, %v3155_v54  ;;  %v1480_v14 = vunpack.c.l.b16 %v1320_v40  ;;  %v975_v21 = vpop.permute.xlu2 %974 }
  0xb3   : > { %v966_v55 = vpop.permute.xlu1 %965 }
  0xb4   : > { %v1257_v48 = vunpack.c.l.bf16 %v953_v27  ;;  %v971_v3 = vperm.slane %v966_v55, %v3155_v54  ;;  %v2231_v27 = vld [vmem:[%s3743_s1 + $0x80] sm:$0xf]  ;;  %v2397_v55 = vld [vmem:[%s3743_s1 + $0x34] sm:$0xf] }
  0xb5   : > { %v2232_v31 = vor.u32 %v2408_v6, %v2231_v27  ;;  %v1229_v6 = vunpack.c.l.bf16 %v2830_v15  ;;  %v2418_v15 = vld [vmem:[%s3743_s1 + $0xd4] sm:$0xf0] }
  0xb6   : > { %v1289_v57 = vmul.f32 %v1257_v48, %v1225_v32  ;;  %v1259_v1 = vunpack.c.l.bf16 %v971_v3  ;;  %v1290_v32 = vmul.f32 %v1258_v30, %v1226_v35  ;;  %v2193_v30 = vld [vmem:[%s3743_s1 + $0x38] sm:$0xf0]  ;;  %v1228_v35 = vunpack.c.l.bf16 %v2824_v12  ;;  %v2271_v12 = vld [vmem:[%s3743_s1 + $0xd0] sm:$0xf] }
  0xb7   : > { %710 = vmatmul.bf16.vlgmr.msra.gmra.mxu2 %v2232_v31 }
  0xb8   : > { %v1321_v17 = vpack.c.bf16 %v1289_v57, %v1289_v57  ;;  %v1291_v36 = vmul.f32 %v1259_v1, %v1227_v39  ;;  %v1322_v40 = vpack.c.bf16 %v1290_v32, %v1290_v32  ;;  %v2196_v1 = vor.u32 %v2397_v55, %v2193_v30  ;;  %v2410_v32 = vld [vmem:[%s3743_s1 + $0x94] sm:$0xf0] }
  0xb9   : > { %v980_v57 = vperm.slane %v975_v21, %v3155_v54  ;;  %v2239_v21 = vld [vmem:[%s3743_s1 + $0x90] sm:$0xf] }
  0xba   : > { %v1481_v16 = vunpack.c.l.b16 %v1321_v17  ;;  %769 = vmatmul.bf16.gmra.mxu1 %v2188_v0  ;;  %v1323_v48 = vpack.c.bf16 %v1291_v36, %v1291_v36  ;;  %v984_v39 = vpop.permute.xlu2 %983  ;;  %v1482_v63 = vunpack.c.l.b16 %v1322_v40  ;;  %v2438_v17 = vld [vmem:[%s2536_s24 + $0x78] sm:$0xff]  ;;  %v2429_v40 = vld [vmem:[%s2536_s24 + $0x30] sm:$0xff] }
  0xbb   : > { %v989_v3 = vperm.slane %v984_v39, %v3155_v54  ;;  %1825 = vmatpush.bf16.msrb.mxu3 %v2438_v17  ;;  %v2399_v39 = vld [vmem:[%s3743_s1 + $0x44] sm:$0xf] }
  0xbc   : > { %v1512_v18 = vpack.c.b16 %v1481_v16, %v1480_v14  ;;  %v2264_v16 = vor.u32 %v2416_v25, %v2263_v20  ;;  %v1483_v0 = vunpack.c.l.b16 %v1323_v48  ;;  %v2430_v14 = vld [vmem:[%s2536_s24 + $0x38] sm:$0xff]  ;;  %v2240_v25 = vor.u32 %v2410_v32, %v2239_v21  ;;  %v2437_v48 = vld [vmem:[%s2536_s24 + $0x70] sm:$0xff] }
  0xbd   : > { %v1261_v20 = vunpack.c.l.bf16 %v989_v3  ;;  %1736 = vmatpush.bf16.msrb.mxu2 %v2430_v14  ;;  %v1230_v32 = vunpack.c.l.bf16 %v2802_v2 }
  0xbe   : > { %1922 = vmatmul.bf16.vlgmr.msrb.gmra.mxu0 %v1512_v18  ;;  %730 = vmatmul.bf16.vlgmr.msra.gmra.mxu3 %v2264_v16  ;;  %v1260_v18 = vunpack.c.l.bf16 %v980_v57  ;;  %v1513_v27 = vpack.c.b16 %v1483_v0, %v1482_v63  ;;  %v2272_v16 = vor.u32 %v2418_v15, %v2271_v12  ;;  %v1002_v63 = vpop.permute.xlu1 %1001  ;;  %v993_v0 = vpop.permute.xlu0 %992 }
  0xbf   : > { %v1293_v31 = vmul.f32 %v1261_v20, %v1229_v6  ;;  %1826 = vmatpush.bf16.msrb.mxu3 %v2437_v48  ;;  %v1007_v3 = vperm.slane %v1002_v63, %v3155_v54  ;;  %v998_v14 = vperm.slane %v993_v0, %v3155_v54  ;;  %v2436_v6 = vld [vmem:[%s2536_s24 + $0x68] sm:$0xff]  ;;  %v1231_v20 = vunpack.c.l.bf16 %v2809_v7  ;;  %v2279_v7 = vld [vmem:[%s3743_s1 + $0xe0] sm:$0xf]  ;;  %v2401_v63 = vld [vmem:[%s3743_s1 + $0x54] sm:$0xf] }
  0xc0   : > { %v1292_v36 = vmul.f32 %v1260_v18, %v1228_v35  ;;  %v2209_v0 = vld [vmem:[%s3743_s1 + $0x58] sm:$0xf0] }
  0xc1   : > { %v1325_v30 = vpack.c.bf16 %v1293_v31, %v1293_v31  ;;  %1737 = vmatpush.bf16.msrb.mxu2 %v2429_v40  ;;  %v1263_v21 = vunpack.c.l.bf16 %v1007_v3  ;;  %v1262_v12 = vunpack.c.l.bf16 %v998_v14  ;;  %v2247_v31 = vld [vmem:[%s3743_s1 + $0xa0] sm:$0xf]  ;;  %v2420_v40 = vld [vmem:[%s3743_s1 + $0xe4] sm:$0xf0] }
  0xc2   : > { %v1324_v55 = vpack.c.bf16 %v1292_v36, %v1292_v36 }
  0xc3   : > { %v1485_v35 = vunpack.c.l.b16 %v1325_v30  ;;  %1827 = vmatpush.bf16.msrb.mxu3 %v2436_v6  ;;  %v1295_v15 = vmul.f32 %v1263_v21, %v1231_v20  ;;  %v1294_v2 = vmul.f32 %v1262_v12, %v1230_v32  ;;  %v2427_v30 = vld [vmem:[%s2536_s24 + $0x20] sm:$0xff]  ;;  %v2426_v32 = vld [vmem:[%s2536_s24 + $0x18] sm:$0xff] }
  0xc4   : > { %v1484_v17 = vunpack.c.l.b16 %v1324_v55  ;;  %v2280_v55 = vor.u32 %v2420_v40, %v2279_v7  ;;  %v2434_v12 = vld [vmem:[%s2536_s24 + $0x58] sm:$0xff] }
  0xc6   : > { %v1514_v36 = vpack.c.b16 %v1485_v35, %v1484_v17  ;;  %v1020_v3 = vpop.permute.xlu0 %1019  ;;  %v1011_v17 = vpop.permute.xlu2 %1010  ;;  %v2212_v35 = vor.u32 %v2401_v63, %v2209_v0  ;;  %v2433_v63 = vld [vmem:[%s2536_s24 + $0x50] sm:$0xff] }
  0xc7   : > { %715 = vmatmul.bf16.gmra.mxu2 %v2240_v25  ;;  %v2412_v25 = vld [vmem:[%s3743_s1 + $0xa4] sm:$0xf0]  ;;  %v1025_v14 = vperm.slane %v1020_v3, %v3155_v54 }
  0xca   : > { %774 = vmatmul.bf16.gmra.mxu1 %v2196_v1  ;;  %v2201_v1 = vld [vmem:[%s3743_s1 + $0x48] sm:$0xf0] }
  0xcb   : > { %v2204_v57 = vor.u32 %v2399_v39, %v2201_v1  ;;  %v2435_v39 = vld [vmem:[%s2536_s24 + $0x60] sm:$0xff]  ;;  %v1327_v1 = vpack.c.bf16 %v1295_v15, %v1295_v15 }
  0xcc   : > { %1828 = vmatpush.bf16.msrb.mxu3 %v2435_v39 }
  0xcd   : > { %v1487_v20 = vunpack.c.l.b16 %v1327_v1 }
  0xce   : > { %1927 = vmatmul.bf16.gmra.mxu0 %v1513_v27  ;;  %735 = vmatmul.bf16.gmra.mxu3 %v2272_v16  ;;  %v2428_v27 = vld [vmem:[%s2536_s24 + $0x28] sm:$0xff]  ;;  %v2248_v16 = vor.u32 %v2412_v25, %v2247_v31  ;;  %v1265_v31 = vunpack.c.l.bf16 %v1025_v14  ;;  %v1232_v25 = vunpack.c.l.bf16 %v2781_v58  ;;  %v2403_v14 = vld [vmem:[%s3743_s1 + $0x64] sm:$0xf] }
  0xcf   : > { %1738 = vmatpush.bf16.msrb.mxu2 %v2428_v27  ;;  %v1016_v27 = vperm.slane %v1011_v17, %v3155_v54  ;;  %v2217_v17 = vld [vmem:[%s3743_s1 + $0x68] sm:$0xf0] }
  0xd0   : > { %1829 = vmatpush.bf16.msrb.mxu3 %v2434_v12 }
  0xd1   : > { %v1264_v7 = vunpack.c.l.bf16 %v1016_v27 }
  0xd3   : > { %1739 = vmatpush.bf16.msrb.mxu2 %v2427_v30  ;;  %v1296_v58 = vmul.f32 %v1264_v7, %v1232_v25  ;;  %v2422_v30 = vld [vmem:[%s3743_s1 + $0xf4] sm:$0xf0]  ;;  %v2432_v25 = vld [vmem:[%s2536_s24 + $0x48] sm:$0xff]  ;;  %v1234_v7 = vunpack.c.l.bf16 %v2767_v49 }
  0xd4   : > { %1830 = vmatpush.bf16.msrb.mxu3 %v2433_v63  ;;  %v2225_v63 = vld [vmem:[%s3743_s1 + $0x78] sm:$0xf0] }
  0xd5   : > { %v1328_v3 = vpack.c.bf16 %v1296_v58, %v1296_v58  ;;  %v2424_v58 = vld [vmem:[%s2536_s24 + $0x8] sm:$0xff] }
  0xd7   : > { %v3220_v18 = vpop.f32.mrf.mxu1  ;;  %720 = vmatmul.bf16.gmra.mxu2 %v2248_v16  ;;  %v2414_v16 = vld [vmem:[%s3743_s1 + $0xb4] sm:$0xf0]  ;;  %v1488_v12 = vunpack.c.l.b16 %v1328_v3  ;;  %v1047_v3 = vpop.permute.xlu0 %1046 }
  0xd8   : > { %1740 = vmatpush.bf16.msrb.mxu2 %v2426_v32  ;;  %v2220_v32 = vor.u32 %v2403_v14, %v2217_v17  ;;  %1831 = vmatpush.bf16.msrb.mxu3 %v2432_v25  ;;  %v1052_v17 = vperm.slane %v1047_v3, %v3155_v54  ;;  %v1236_v25 = vunpack.c.l.bf16 %v2749_v41  ;;  %v2233_v41 = vld [vmem:[%s3743_s1 + $0x88] sm:$0xf0] }
  0xda   : > { %779 = vmatmul.bf16.gmra.mxu1 %v2204_v57  ;;  %v1326_v57 = vpack.c.bf16 %v1294_v2, %v1294_v2  ;;  %v2255_v2 = vld [vmem:[%s3743_s1 + $0xb0] sm:$0xf] }
  0xdc   : > { %v1486_v6 = vunpack.c.l.b16 %v1326_v57  ;;  %v2425_v57 = vld [vmem:[%s2536_s24 + $0x10] sm:$0xff] }
  0xdd   : > { %1741 = vmatpush.bf16.msrb.mxu2 %v2425_v57 }
  0xde   : > { %1932 = vmatmul.bf16.gmra.mxu0 %v1514_v36  ;;  %740 = vmatmul.bf16.gmra.mxu3 %v2280_v55  ;;  %v1233_v36 = vunpack.c.l.bf16 %v2788_v62  ;;  %v1515_v15 = vpack.c.b16 %v1487_v20, %v1486_v6  ;;  %v2287_v62 = vld [vmem:[%s3743_s1 + $0xf0] sm:$0xf]  ;;  %v2256_v55 = vor.u32 %v2414_v16, %v2255_v2  ;;  %v1038_v6 = vpop.permute.xlu2 %1037  ;;  %v1235_v2 = vunpack.c.l.bf16 %v2769_v50  ;;  %v2405_v50 = vld [vmem:[%s3743_s1 + $0x74] sm:$0xf] }
  0xdf   : > { %v3238_v48 = vpop.f32.mrf.mxu1  ;;  %v2288_v1 = vor.u32 %v2422_v30, %v2287_v62  ;;  %v1043_v20 = vperm.slane %v1038_v6, %v3155_v54 }
  0xe0   : > { %v1297_v40 = vmul.f32 %v1265_v31, %v1233_v36 }
  0xe1   : > { %v1267_v16 = vunpack.c.l.bf16 %v1043_v20  ;;  %1742 = vmatpush.bf16.msrb.mxu2 %v2424_v58  ;;  %v671_v20 = vpop.f32.mrf.mxu0 }
  0xe2   : > { %v1329_v0 = vpack.c.bf16 %v1297_v40, %v1297_v40  ;;  %v2431_v40 = vld [vmem:[%s2536_s24 + $0x40] sm:$0xff] }
  0xe3   : > { %1832 = vmatpush.bf16.msrb.mxu3 %v2431_v40  ;;  %v1299_v30 = vmul.f32 %v1267_v16, %v1235_v2 }
  0xe4   : > { %v1489_v36 = vunpack.c.l.b16 %v1329_v0  ;;  %v2423_v0 = vld [vmem:[%s2536_s24] sm:$0xff] }
  0xe5   : > { %v1331_v57 = vpack.c.bf16 %v1299_v30, %v1299_v30  ;;  %1743 = vmatpush.bf16.msrb.mxu2 %v2423_v0  ;;  %v374_v30 = vld [vmem:[%s3744_s2] sm:$0xff] }
  0xe6   : > { %v1516_v62 = vpack.c.b16 %v1489_v36, %v1488_v12  ;;  %v1237_v12 = vunpack.c.l.bf16 %v2751_v42  ;;  %v2407_v42 = vld [vmem:[%s3743_s1 + $0x84] sm:$0xf]  ;;  %v1065_v0 = vpop.permute.xlu2 %1064 }
  0xe7   : > { %v3250_v21 = vpop.f32.mrf.mxu1  ;;  %725 = vmatmul.bf16.gmra.mxu2 %v2256_v55  ;;  %v1491_v6 = vunpack.c.l.b16 %v1331_v57  ;;  %v2236_v57 = vor.u32 %v2407_v42, %v2233_v41  ;;  %v2409_v42 = vld [vmem:[%s3743_s1 + $0x94] sm:$0xf] }
  0xe9   : > { %v673_v40 = vpop.f32.mrf.mxu0 }
  0xea   : > { %784 = vmatmul.bf16.gmra.mxu1 %v2212_v35  ;;  %v1029_v35 = vpop.permute.xlu1 %1028 }
  0xeb   : > { %v1034_v27 = vperm.slane %v1029_v35, %v3155_v54 }
  0xee   : > { %1937 = vmatmul.bf16.gmra.mxu0 %v1515_v15  ;;  %745 = vmatmul.bf16.gmra.mxu3 %v2288_v1  ;;  %v1266_v15 = vunpack.c.l.bf16 %v1034_v27  ;;  %v2228_v27 = vor.u32 %v2405_v50, %v2225_v63 }
  0xef   : > { %v3268_v39 = vpop.f32.mrf.mxu1 }
  0xf0   : > { %v1298_v55 = vmul.f32 %v1266_v15, %v1234_v7  ;;  %v1268_v7 = vunpack.c.l.bf16 %v1052_v17  ;;  %v672_v17 = vadd.f32 %v671_v20, %v374_v30 }
  0xf2   : > { %v1330_v49 = vpack.c.bf16 %v1298_v55, %v1298_v55  ;;  %v1056_v14 = vpop.permute.xlu1 %1055  ;;  %v1300_v16 = vmul.f32 %v1268_v7, %v1236_v25 }
  0xf3   : > { %v1061_v35 = vperm.slane %v1056_v14, %v3155_v54  ;;  %v1070_v14 = vperm.slane %v1065_v0, %v3155_v54 }
  0xf4   : > { %v1332_v55 = vpack.c.bf16 %v1300_v16, %v1300_v16 }
  0xf5   : > { %v1269_v36 = vunpack.c.l.bf16 %v1061_v35  ;;  %v1270_v25 = vunpack.c.l.bf16 %v1070_v14 }
  0xf6   : > { %v1492_v50 = vunpack.c.l.b16 %v1332_v55 }
  0xf7   : > { %v3280_v31 = vpop.f32.mrf.mxu1  ;;  %v1301_v2 = vmul.f32 %v1269_v36, %v1237_v12  ;;  %v1238_v36 = vunpack.c.l.bf16 %v2739_v37  ;;  %v2241_v37 = vld [vmem:[%s3743_s1 + $0x98] sm:$0xf0] }
  0xf8   : > { %v2244_v0 = vor.u32 %v2409_v42, %v2241_v37 }
  0xf9   : > { %v1333_v58 = vpack.c.bf16 %v1301_v2, %v1301_v2 }
  0xfa   : > { %789 = vmatmul.bf16.gmra.mxu1 %v2220_v32 }
  0xfb   : > { %v1493_v63 = vunpack.c.l.b16 %v1333_v58  ;;  %v1302_v58 = vmul.f32 %v1270_v25, %v1238_v36  ;;  %v377_v25 = vld [vmem:[%s3744_s2 + $0x18] sm:$0xff] }
  0xfd   : > { %v1518_v35 = vpack.c.b16 %v1493_v63, %v1492_v50  ;;  %v1334_v30 = vpack.c.bf16 %v1302_v58, %v1302_v58  ;;  %v1083_v63 = vpop.permute.xlu1 %1082 }
  0xfe   : > { %1942 = vmatmul.bf16.gmra.mxu0 %v1516_v62  ;;  %1833 = vmatmul.bf16.vlgmr.msrb.gmra.mxu3 %v2926_v5  ;;  %v1490_v5 = vunpack.c.l.b16 %v1330_v49  ;;  %v1074_v49 = vpop.permute.xlu0 %1073 }
  0xff   : > { %v3287_v1 = vpop.f32.mrf.mxu1  ;;  %v1079_v3 = vperm.slane %v1074_v49, %v3155_v54 }
 0x100   : > { %v1517_v15 = vpack.c.b16 %v1491_v6, %v1490_v5  ;;  %v375_v5 = vld [vmem:[%s3744_s2 + $0x8] sm:$0xff]  ;;  %v676_v6 = vpop.f32.mrf.mxu0 }
 0x101   : > { %v1271_v12 = vunpack.c.l.bf16 %v1079_v3  ;;  %v1092_v3 = vpop.permute.xlu2 %1091 }
 0x107   : > { %v3299_v32 = vpop.f32.mrf.mxu1 }
 0x108   : > { %v678_v50 = vpop.f32.mrf.mxu0 }
 0x109   : > { %v679_v58 = vadd.f32 %v678_v50, %v377_v25  ;;  %v378_v50 = vld [vmem:[%s3744_s2 + $0x20] sm:$0xff]  ;;  %v379_v25 = vld [vmem:[%s3744_s2 + $0x28] sm:$0xff] }
 0x10a   : > { %794 = vmatmul.bf16.gmra.mxu1 %v2228_v27  ;;  %v1239_v27 = vunpack.c.l.bf16 %v2741_v38 }
 0x10c   : > { %v1303_v16 = vmul.f32 %v1271_v12, %v1239_v27  ;;  %v1494_v27 = vunpack.c.l.b16 %v1334_v30  ;;  %v1240_v12 = vunpack.c.l.bf16 %v3063_v19 }
 0x10e   : > { %1947 = vmatmul.bf16.gmra.mxu0 %v1517_v15  ;;  %1838 = vmatmul.bf16.gmra.mxu3 %v2903_v52  ;;  %v674_v15 = vadd.f32 %v673_v40, %v375_v5  ;;  %v1335_v41 = vpack.c.bf16 %v1303_v16, %v1303_v16 }
 0x10f   : > { %v3303_v62 = vpop.f32.mrf.mxu1 }
 0x110   : > { %v1495_v5 = vunpack.c.l.b16 %v1335_v41  ;;  %v2411_v41 = vld [vmem:[%s3743_s1 + $0xa4] sm:$0xf] }
 0x112   : > { %v1519_v16 = vpack.c.b16 %v1495_v5, %v1494_v27 }
 0x117   : > { %v760_v52 = vpop.f32.mrf.mxu1 }
 0x118   : > { %v761_v7 = vadd.f32 %v760_v52, %v672_v17  ;;  %v1088_v52 = vperm.slane %v1083_v63, %v3155_v54  ;;  %v1097_v17 = vperm.slane %v1092_v3, %v3155_v54  ;;  %v1101_v63 = vpop.permute.xlu0 %1100 }
 0x11a   : > { %799 = vmatmul.bf16.gmra.mxu1 %v2236_v57  ;;  %v840_v20 = vpack.c.bf16 %v761_v7, %v761_v7  ;;  %v376_v57 = vld [vmem:[%s3744_s2 + $0x10] sm:$0xff]  ;;  %v1272_v36 = vunpack.c.l.bf16 %v1088_v52  ;;  %v1241_v7 = vunpack.c.l.bf16 %v3065_v24  ;;  %v2249_v24 = vld [vmem:[%s3743_s1 + $0xa8] sm:$0xf0]  ;;  %v1106_v52 = vperm.slane %v1101_v63, %v3155_v54 }
 0x11c   : > { %v1384_v40 = vunpack.c.l.b16 %v840_v20  ;;  %v681_v20 = vpop.f32.mrf.mxu0 }
 0x11d   : > { %v682_v27 = vadd.f32 %v681_v20, %v378_v50 }
 0x11e   : > { %1952 = vmatmul.bf16.gmra.mxu0 %v1518_v35  ;;  %1843 = vmatmul.bf16.gmra.mxu3 %v2875_v33  ;;  %v677_v35 = vadd.f32 %v676_v6, %v376_v57 }
 0x11f   : > { %v762_v2 = vpop.f32.mrf.mxu1 }
 0x120   : > { %v763_v55 = vadd.f32 %v762_v2, %v674_v15  ;;  %v1273_v15 = vunpack.c.l.bf16 %v1097_v17 }
 0x122   : > { %v841_v38 = vpack.c.bf16 %v763_v55, %v763_v55  ;;  %v1304_v55 = vmul.f32 %v1272_v36, %v1240_v12  ;;  %v1243_v12 = vunpack.c.l.bf16 %v3040_v47  ;;  %v1242_v36 = vunpack.c.l.bf16 %v3038_v46  ;;  %v2413_v46 = vld [vmem:[%s3743_s1 + $0xb4] sm:$0xf] }
 0x124   : > { %v1385_v49 = vunpack.c.l.b16 %v841_v38  ;;  %v1305_v38 = vmul.f32 %v1273_v15, %v1241_v7  ;;  %v1336_v30 = vpack.c.bf16 %v1304_v55, %v1304_v55  ;;  %v683_v5 = vpop.f32.mrf.mxu0  ;;  %v1274_v15 = vunpack.c.l.bf16 %v1106_v52 }
 0x126   : > { %v1416_v33 = vpack.c.b16 %v1385_v49, %v1384_v40  ;;  %v1337_v40 = vpack.c.bf16 %v1305_v38, %v1305_v38  ;;  %v1306_v20 = vmul.f32 %v1274_v15, %v1242_v36 }
 0x127   : > { %v765_v14 = vpop.f32.mrf.mxu1 }
 0x128   : > { %1744 = vmatmul.bf16.vlgmr.msrb.gmra.mxu2 %v1416_v33  ;;  %v766_v2 = vadd.f32 %v765_v14, %v677_v35  ;;  %v1496_v14 = vunpack.c.l.b16 %v1336_v30  ;;  %v1497_v35 = vunpack.c.l.b16 %v1337_v40 }
 0x12a   : > { %804 = vmatmul.bf16.gmra.mxu1 %v2244_v0  ;;  %v842_v42 = vpack.c.bf16 %v766_v2, %v766_v2  ;;  %v1110_v0 = vpop.permute.xlu1 %1109 }
 0x12b   : > { %v1115_v17 = vperm.slane %v1110_v0, %v3155_v54 }
 0x12c   : > { %v1386_v49 = vunpack.c.l.b16 %v842_v42 }
 0x12d   : > { %v1275_v7 = vunpack.c.l.bf16 %v1115_v17 }
 0x12e   : > { %1957 = vmatmul.bf16.gmra.mxu0 %v1519_v16  ;;  %1848 = vmatmul.bf16.gmra.mxu3 %v2847_v22  ;;  %v2252_v22 = vor.u32 %v2411_v41, %v2249_v24  ;;  %v1520_v16 = vpack.c.b16 %v1497_v35, %v1496_v14  ;;  %v1338_v24 = vpack.c.bf16 %v1306_v20, %v1306_v20  ;;  %v1245_v35 = vunpack.c.l.bf16 %v3007_v11 }
 0x12f   : > { %v767_v6 = vpop.f32.mrf.mxu1  ;;  %v1307_v55 = vmul.f32 %v1275_v7, %v1243_v12  ;;  %v1244_v12 = vunpack.c.l.bf16 %v3005_v8  ;;  %v2415_v8 = vld [vmem:[%s3743_s1 + $0xc4] sm:$0xf] }
 0x130   : > { %v768_v37 = vadd.f32 %v767_v6, %v679_v58  ;;  %v684_v58 = vadd.f32 %v683_v5, %v379_v25  ;;  %v381_v5 = vld [vmem:[%s3744_s2 + $0x38] sm:$0xff] }
 0x131   : > { %v1339_v41 = vpack.c.bf16 %v1307_v55, %v1307_v55 }
 0x132   : > { %v843_v19 = vpack.c.bf16 %v768_v37, %v768_v37  ;;  %v686_v37 = vpop.f32.mrf.mxu0 }
 0x133   : > { %v1499_v52 = vunpack.c.l.b16 %v1339_v41 }
 0x134   : > { %v1387_v57 = vunpack.c.l.b16 %v843_v19  ;;  %v2257_v19 = vld [vmem:[%s3743_s1 + $0xb8] sm:$0xf0] }
 0x135   : > { %v2260_v63 = vor.u32 %v2413_v46, %v2257_v19 }
 0x136   : > { %v1417_v33 = vpack.c.b16 %v1387_v57, %v1386_v49  ;;  %v1128_v57 = vpop.permute.xlu0 %1127 }
 0x137   : > { %v770_v3 = vpop.f32.mrf.mxu1 }
 0x138   : > { %1749 = vmatmul.bf16.gmra.mxu2 %v1417_v33  ;;  %v771_v2 = vadd.f32 %v770_v3, %v682_v27  ;;  %v1133_v33 = vperm.slane %v1128_v57, %v3155_v54  ;;  %v1498_v3 = vunpack.c.l.b16 %v1338_v24  ;;  %v1137_v24 = vpop.permute.xlu1 %1136 }
 0x13a   : > { %809 = vmatmul.bf16.gmra.mxu1 %v2252_v22  ;;  %v844_v38 = vpack.c.bf16 %v771_v2, %v771_v2  ;;  %v1119_v22 = vpop.permute.xlu2 %1118  ;;  %v1277_v27 = vunpack.c.l.bf16 %v1133_v33  ;;  %v1521_v7 = vpack.c.b16 %v1499_v52, %v1498_v3  ;;  %v688_v2 = vpop.f32.mrf.mxu0  ;;  %v383_v52 = vld [vmem:[%s3744_s2 + $0x48] sm:$0xff]  ;;  %v1246_v3 = vunpack.c.l.bf16 %v2990_v51 }
 0x13b   : > { %v1124_v14 = vperm.slane %v1119_v22, %v3155_v54 }
 0x13c   : > { %v1388_v30 = vunpack.c.l.b16 %v844_v38 }
 0x13d   : > { %v1276_v36 = vunpack.c.l.bf16 %v1124_v14 }
 0x13e   : > { %1962 = vmatmul.bf16.gmra.mxu0 %v1520_v16  ;;  %1853 = vmatmul.bf16.gmra.mxu3 %v2827_v13  ;;  %v380_v13 = vld [vmem:[%s3744_s2 + $0x30] sm:$0xff]  ;;  %v689_v16 = vadd.f32 %v688_v2, %v381_v5 }
 0x13f   : > { %v772_v6 = vpop.f32.mrf.mxu1  ;;  %v687_v17 = vadd.f32 %v686_v37, %v380_v13  ;;  %v1308_v55 = vmul.f32 %v1276_v36, %v1244_v12  ;;  %v1142_v13 = vperm.slane %v1137_v24, %v3155_v54  ;;  %v3399_v36 = vpop.f32.mrf.mxu2 }
 0x140   : > { %v773_v42 = vadd.f32 %v772_v6, %v684_v58  ;;  %v1309_v6 = vmul.f32 %v1277_v27, %v1245_v35 }
 0x141   : > { %v3363_v49 = vpop.f32.mrf.mxu3  ;;  %v1340_v37 = vpack.c.bf16 %v1308_v55, %v1308_v55  ;;  %v1278_v14 = vunpack.c.l.bf16 %v1142_v13 }
 0x142   : > { %v845_v47 = vpack.c.bf16 %v773_v42, %v773_v42  ;;  %v2265_v42 = vld [vmem:[%s3743_s1 + $0xc8] sm:$0xf0]  ;;  %v1146_v57 = vpop.permute.xlu2 %1145  ;;  %v3418_v13 = vpop.f32.mrf.mxu0 }
 0x143   : > { %v1500_v33 = vunpack.c.l.b16 %v1340_v37  ;;  %v1151_v22 = vperm.slane %v1146_v57, %v3155_v54 }
 0x144   : > { %v1389_v40 = vunpack.c.l.b16 %v845_v47  ;;  %v1341_v47 = vpack.c.bf16 %v1309_v6, %v1309_v6  ;;  %v2273_v6 = vld [vmem:[%s3743_s1 + $0xd8] sm:$0xf0] }
 0x145   : > { %v1279_v35 = vunpack.c.l.bf16 %v1151_v22 }
 0x146   : > { %v1418_v50 = vpack.c.b16 %v1389_v40, %v1388_v30  ;;  %v2268_v40 = vor.u32 %v2415_v8, %v2265_v42  ;;  %v1164_v8 = vpop.permute.xlu1 %1163  ;;  %v1155_v42 = vpop.permute.xlu0 %1154 }
 0x147   : > { %v775_v0 = vpop.f32.mrf.mxu1 }
 0x148   : > { %1754 = vmatmul.bf16.gmra.mxu2 %v1418_v50  ;;  %v776_v25 = vadd.f32 %v775_v0, %v687_v17  ;;  %v1247_v17 = vunpack.c.l.bf16 %v2992_v53  ;;  %v2417_v53 = vld [vmem:[%s3743_s1 + $0xd4] sm:$0xf] }
 0x149   : > { %v3375_v15 = vpop.f32.mrf.mxu3  ;;  %v2276_v37 = vor.u32 %v2417_v53, %v2273_v6 }
 0x14a   : > { %814 = vmatmul.bf16.gmra.mxu1 %v2260_v63  ;;  %v846_v20 = vpack.c.bf16 %v776_v25, %v776_v25  ;;  %v1501_v63 = vunpack.c.l.b16 %v1341_v47  ;;  %v694_v25 = vadd.f32 %v3238_v48, %v383_v52  ;;  %v1311_v2 = vmul.f32 %v1279_v35, %v1247_v17  ;;  %v1173_v6 = vpop.permute.xlu2 %1172 }
 0x14c   : > { %v1390_v46 = vunpack.c.l.b16 %v846_v20  ;;  %v1522_v5 = vpack.c.b16 %v1501_v63, %v1500_v33  ;;  %v1343_v20 = vpack.c.bf16 %v1311_v2, %v1311_v2  ;;  %v1249_v63 = vunpack.c.l.bf16 %v2959_v29  ;;  %v3432_v29 = vpop.f32.mrf.mxu0 }
 0x14d   : > { %v1248_v33 = vunpack.c.l.bf16 %v2957_v28 }
 0x14e   : > { %1967 = vmatmul.bf16.gmra.mxu0 %v1521_v7  ;;  %1858 = vmatmul.bf16.gmra.mxu3 %v2805_v4  ;;  %v382_v4 = vld [vmem:[%s3744_s2 + $0x40] sm:$0xff]  ;;  %v1310_v7 = vmul.f32 %v1278_v14, %v1246_v3 }
 0x14f   : > { %v777_v58 = vpop.f32.mrf.mxu1  ;;  %v692_v0 = vadd.f32 %v3220_v18, %v382_v4  ;;  %v1503_v4 = vunpack.c.l.b16 %v1343_v20 }
 0x150   : > { %v778_v11 = vadd.f32 %v777_v58, %v689_v16  ;;  %v1342_v55 = vpack.c.bf16 %v1310_v7, %v1310_v7  ;;  %v2419_v7 = vld [vmem:[%s3743_s1 + $0xe4] sm:$0xf] }
 0x151   : > { %v3384_v41 = vpop.f32.mrf.mxu3 }
 0x152   : > { %v847_v38 = vpack.c.bf16 %v778_v11, %v778_v11  ;;  %v1502_v24 = vunpack.c.l.b16 %v1342_v55  ;;  %v1182_v55 = vpop.permute.xlu0 %1181 }
 0x154   : > { %v1391_v19 = vunpack.c.l.b16 %v847_v38  ;;  %v1523_v3 = vpack.c.b16 %v1503_v4, %v1502_v24  ;;  %v1251_v24 = vunpack.c.l.bf16 %v2936_v10  ;;  %v1250_v4 = vunpack.c.l.bf16 %v2934_v9  ;;  %v2421_v9 = vld [vmem:[%s3743_s1 + $0xf4] sm:$0xf] }
 0x156   : > { %v1419_v30 = vpack.c.b16 %v1391_v19, %v1390_v46  ;;  %v3414_v19 = vpop.f32.mrf.mxu2 }
 0x157   : > { %v780_v50 = vpop.f32.mrf.mxu1 }
 0x158   : > { %1759 = vmatmul.bf16.gmra.mxu2 %v1419_v30  ;;  %v781_v27 = vadd.f32 %v780_v50, %v692_v0  ;;  %v1169_v30 = vperm.slane %v1164_v8, %v3155_v54  ;;  %v385_v50 = vld [vmem:[%s3744_s2 + $0x58] sm:$0xff] }
 0x159   : > { %v3397_v12 = vpop.f32.mrf.mxu3  ;;  %v699_v17 = vadd.f32 %v3268_v39, %v385_v50  ;;  %v2281_v39 = vld [vmem:[%s3743_s1 + $0xe8] sm:$0xf0]  ;;  %v3455_v50 = vpop.f32.mrf.mxu0 }
 0x15a   : > { %819 = vmatmul.bf16.gmra.mxu1 %v2268_v40  ;;  %v848_v16 = vpack.c.bf16 %v781_v27, %v781_v27  ;;  %v1160_v40 = vperm.slane %v1155_v42, %v3155_v54  ;;  %v1281_v22 = vunpack.c.l.bf16 %v1169_v30  ;;  %v2284_v20 = vor.u32 %v2419_v7, %v2281_v39  ;;  %v1200_v7 = vpop.permute.xlu2 %1199 }
 0x15c   : > { %v1392_v48 = vunpack.c.l.b16 %v848_v16  ;;  %v1280_v0 = vunpack.c.l.bf16 %v1160_v40 }
 0x15e   : > { %1972 = vmatmul.bf16.gmra.mxu0 %v1522_v5  ;;  %1863 = vmatmul.bf16.gmra.mxu3 %v2784_v59  ;;  %v384_v59 = vld [vmem:[%s3744_s2 + $0x50] sm:$0xff]  ;;  %v1312_v27 = vmul.f32 %v1280_v0, %v1248_v33 }
 0x15f   : > { %v782_v18 = vpop.f32.mrf.mxu1  ;;  %v697_v57 = vadd.f32 %v3250_v21, %v384_v59  ;;  %v1313_v21 = vmul.f32 %v1281_v22, %v1249_v63 }
 0x160   : > { %v783_v58 = vadd.f32 %v782_v18, %v694_v25  ;;  %v3429_v18 = vpop.f32.mrf.mxu2  ;;  %v1344_v16 = vpack.c.bf16 %v1312_v27, %v1312_v27 }
 0x161   : > { %v3409_v38 = vpop.f32.mrf.mxu3  ;;  %v1345_v2 = vpack.c.bf16 %v1313_v21, %v1313_v21  ;;  %v2289_v21 = vld [vmem:[%s3743_s1 + $0xf8] sm:$0xf0] }
 0x162   : > { %v849_v51 = vpack.c.bf16 %v783_v58, %v783_v58 }
 0x163   : > { %v1505_v42 = vunpack.c.l.b16 %v1345_v2  ;;  %v1191_v2 = vpop.permute.xlu1 %1190 }
 0x164   : > { %v1393_v11 = vunpack.c.l.b16 %v849_v51 }
 0x166   : > { %v1420_v47 = vpack.c.b16 %v1393_v11, %v1392_v48  ;;  %v386_v48 = vld [vmem:[%s3744_s2 + $0x60] sm:$0xff]  ;;  %v1187_v11 = vperm.slane %v1182_v55, %v3155_v54 }
 0x167   : > { %v785_v46 = vpop.f32.mrf.mxu1  ;;  %v702_v59 = vadd.f32 %v3280_v31, %v386_v48  ;;  %v1205_v48 = vperm.slane %v1200_v7, %v3155_v54 }
 0x168   : > { %1764 = vmatmul.bf16.gmra.mxu2 %v1420_v47  ;;  %v786_v52 = vadd.f32 %v785_v46, %v697_v57  ;;  %v1504_v47 = vunpack.c.l.b16 %v1344_v16  ;;  %v387_v46 = vld [vmem:[%s3744_s2 + $0x68] sm:$0xff]  ;;  %v1283_v30 = vunpack.c.l.bf16 %v1187_v11  ;;  %v3452_v40 = vpop.f32.mrf.mxu2 }
 0x169   : > { %v3426_v14 = vpop.f32.mrf.mxu3  ;;  %v704_v31 = vadd.f32 %v3287_v1, %v387_v46 }
 0x16a   : > { %824 = vmatmul.bf16.gmra.mxu1 %v2276_v37  ;;  %v850_v5 = vpack.c.bf16 %v786_v52, %v786_v52  ;;  %v1178_v37 = vperm.slane %v1173_v6, %v3155_v54  ;;  %v1524_v33 = vpack.c.b16 %v1505_v42, %v1504_v47  ;;  %v1315_v52 = vmul.f32 %v1283_v30, %v1251_v24 }
 0x16b   : > { %v1196_v6 = vperm.slane %v1191_v2, %v3155_v54  ;;  %v1252_v42 = vunpack.c.l.bf16 %v2909_v60 }
 0x16c   : > { %v1394_v58 = vunpack.c.l.b16 %v850_v5  ;;  %v1282_v57 = vunpack.c.l.bf16 %v1178_v37  ;;  %v1347_v27 = vpack.c.bf16 %v1315_v52, %v1315_v52  ;;  %v1253_v37 = vunpack.c.l.bf16 %v2911_v61 }
 0x16d   : > { %v1284_v47 = vunpack.c.l.bf16 %v1196_v6  ;;  %v1254_v6 = vunpack.c.l.bf16 %v2886_v43 }
 0x16e   : > { %1977 = vmatmul.bf16.gmra.mxu0 %v1523_v3  ;;  %1868 = vmatmul.bf16.gmra.mxu3 %v2779_v56  ;;  %v1314_v3 = vmul.f32 %v1282_v57, %v1250_v4 }
 0x16f   : > { %v787_v35 = vpop.f32.mrf.mxu1 }
 0x170   : > { %v788_v25 = vadd.f32 %v787_v35, %v699_v17  ;;  %v1346_v5 = vpack.c.bf16 %v1314_v3, %v1314_v3  ;;  %v3469_v39 = vpop.f32.mrf.mxu2 }
 0x171   : > { %v3440_v53 = vpop.f32.mrf.mxu3 }
 0x172   : > { %v851_v28 = vpack.c.bf16 %v788_v25, %v788_v25 }
 0x174   : > { %v1395_v51 = vunpack.c.l.b16 %v851_v28 }
 0x176   : > { %v1421_v56 = vpack.c.b16 %v1395_v51, %v1394_v58  ;;  %v2292_v58 = vor.u32 %v2421_v9, %v2289_v21  ;;  %v388_v51 = vld [vmem:[%s3744_s2 + $0x70] sm:$0xff]  ;;  %v1209_v9 = vpop.permute.xlu0 %1208 }
 0x177   : > { %v790_v8 = vpop.f32.mrf.mxu1  ;;  %v707_v11 = vadd.f32 %v3299_v32, %v388_v51  ;;  %v1255_v51 = vunpack.c.l.bf16 %v2888_v44 }
 0x178   : > { %1769 = vmatmul.bf16.gmra.mxu2 %v1421_v56  ;;  %v791_v63 = vadd.f32 %v790_v8, %v702_v59  ;;  %v1507_v56 = vunpack.c.l.b16 %v1347_v27  ;;  %v389_v8 = vld [vmem:[%s3744_s2 + $0x78] sm:$0xff]  ;;  %v1285_v59 = vunpack.c.l.bf16 %v1205_v48  ;;  %v3487_v57 = vpop.f32.mrf.mxu2  ;;  %v390_v27 = vld [vmem:[%s3744_s2 + $0x80] sm:$0xff] }
 0x179   : > { %v3457_v22 = vpop.f32.mrf.mxu3  ;;  %v709_v4 = vadd.f32 %v3303_v62, %v389_v8  ;;  %v1218_v62 = vpop.permute.xlu1 %1217 }
 0x17a   : > { %829 = vmatmul.bf16.gmra.mxu1 %v2284_v20  ;;  %v852_v17 = vpack.c.bf16 %v791_v63, %v791_v63  ;;  %v1506_v20 = vunpack.c.l.b16 %v1346_v5  ;;  %v1316_v63 = vmul.f32 %v1284_v47, %v1252_v42 }
 0x17c   : > { %v1396_v1 = vunpack.c.l.b16 %v852_v17  ;;  %v1525_v24 = vpack.c.b16 %v1507_v56, %v1506_v20  ;;  %v1348_v52 = vpack.c.bf16 %v1316_v63, %v1316_v63 }
 0x17e   : > { %1982 = vmatmul.bf16.gmra.mxu0 %v1524_v33  ;;  %1873 = vmatmul.bf16.gmra.mxu3 %v3078_v45  ;;  %v3471_v45 = vpop.f32.mrf.mxu0  ;;  %v1317_v33 = vmul.f32 %v1285_v59, %v1253_v37 }
 0x17f   : > { %v792_v0 = vpop.f32.mrf.mxu1 }
 0x180   : > { %v793_v10 = vadd.f32 %v792_v0, %v704_v31  ;;  %v1349_v3 = vpack.c.bf16 %v1317_v33, %v1317_v33  ;;  %v3499_v2 = vpop.f32.mrf.mxu2 }
 0x181   : > { %v3467_v28 = vpop.f32.mrf.mxu3 }
 0x182   : > { %v853_v35 = vpack.c.bf16 %v793_v10, %v793_v10  ;;  %v1509_v7 = vunpack.c.l.b16 %v1349_v3  ;;  %v393_v3 = vld [vmem:[%s3744_s2 + $0x98] sm:$0xff] }
 0x184   : > { %v1397_v25 = vunpack.c.l.b16 %v853_v35 }
 0x186   : > { %v1422_v16 = vpack.c.b16 %v1397_v25, %v1396_v1  ;;  %v3489_v31 = vpop.f32.mrf.mxu0  ;;  %v1508_v1 = vunpack.c.l.b16 %v1348_v52  ;;  %v1223_v25 = vperm.slane %v1218_v62, %v3155_v54 }
 0x187   : > { %v795_v55 = vpop.f32.mrf.mxu1 }
 0x188   : > { %1774 = vmatmul.bf16.gmra.mxu2 %v1422_v16  ;;  %v796_v46 = vadd.f32 %v795_v55, %v707_v11  ;;  %v712_v16 = vadd.f32 %v3399_v36, %v390_v27  ;;  %v391_v55 = vld [vmem:[%s3744_s2 + $0x88] sm:$0xff]  ;;  %v1287_v56 = vunpack.c.l.bf16 %v1223_v25  ;;  %v3513_v59 = vpop.f32.mrf.mxu2 }
 0x189   : > { %v3484_v30 = vpop.f32.mrf.mxu3  ;;  %v714_v8 = vadd.f32 %v3414_v19, %v391_v55 }
 0x18a   : > { %834 = vmatmul.bf16.gmra.mxu1 %v2292_v58  ;;  %v854_v0 = vpack.c.bf16 %v796_v46, %v796_v46  ;;  %v1319_v42 = vmul.f32 %v1287_v56, %v1255_v51 }
 0x18c   : > { %v1398_v17 = vunpack.c.l.b16 %v854_v0  ;;  %v1351_v46 = vpack.c.bf16 %v1319_v42, %v1319_v42  ;;  %v392_v0 = vld [vmem:[%s3744_s2 + $0x90] sm:$0xff] }
 0x18e   : > { %1987 = vmatmul.bf16.gmra.mxu0 %v1525_v24  ;;  %1878 = vmatmul.bf16.gmra.mxu3 %v3067_v26  ;;  %v1214_v26 = vperm.slane %v1209_v9, %v3155_v54  ;;  %v3502_v58 = vpop.f32.mrf.mxu0  ;;  %v1526_v54 = vpack.c.b16 %v1509_v7, %v1508_v1 }
 0x18f   : > { %v797_v32 = vpop.f32.mrf.mxu1 }
 0x190   : > { %v798_v60 = vadd.f32 %v797_v32, %v709_v4  ;;  %v1286_v20 = vunpack.c.l.bf16 %v1214_v26 }
 0x191   : > { %v3492_v35 = vpop.f32.mrf.mxu3 }
 0x192   : > { %v855_v61 = vpack.c.bf16 %v798_v60, %v798_v60  ;;  %v1318_v47 = vmul.f32 %v1286_v20, %v1254_v6 }
 0x194   : > { %v1399_v10 = vunpack.c.l.b16 %v855_v61  ;;  %v1350_v24 = vpack.c.bf16 %v1318_v47, %v1318_v47  ;;  %v1511_v61 = vunpack.c.l.b16 %v1351_v46 }
 0x196   : > { %v1423_v21 = vpack.c.b16 %v1399_v10, %v1398_v17  ;;  %v3515_v4 = vpop.f32.mrf.mxu0  ;;  %v1510_v52 = vunpack.c.l.b16 %v1350_v24 }
 0x197   : > { %v800_v5 = vpop.f32.mrf.mxu1 }
 0x198   : > { %1779 = vmatmul.bf16.gmra.mxu2 %v1423_v21  ;;  %v801_v48 = vadd.f32 %v800_v5, %v712_v16  ;;  %v1527_v9 = vpack.c.b16 %v1511_v61, %v1510_v52  ;;  %v719_v5 = vadd.f32 %v3452_v40, %v393_v3 }
 0x199   : > { %v3509_v11 = vpop.f32.mrf.mxu3 }
 0x19a   : > { %v856_v37 = vpack.c.bf16 %v801_v48, %v801_v48 }
 0x19c   : > { %v1400_v32 = vunpack.c.l.b16 %v856_v37 }
 0x19e   : > { %1992 = vmatmul.bf16.gmra.mxu0 %v1526_v54  ;;  %1883 = vmatmul.bf16.gmra.mxu3 %v3027_v34  ;;  %v717_v34 = vadd.f32 %v3429_v18, %v392_v0  ;;  %v3529_v27 = vpop.f32.mrf.mxu0 }
 0x19f   : > { %v802_v36 = vpop.f32.mrf.mxu1 }
 0x1a0   : > { %v803_v44 = vadd.f32 %v802_v36, %v714_v8 }
 0x1a1   : > { %v3517_v33 = vpop.f32.mrf.mxu3 }
 0x1a2   : > { %v857_v43 = vpack.c.bf16 %v803_v44, %v803_v44 }
 0x1a4   : > { %v1401_v63 = vunpack.c.l.b16 %v857_v43 }
 0x1a6   : > { %v1424_v19 = vpack.c.b16 %v1401_v63, %v1400_v32 }
 0x1a7   : > { %v805_v60 = vpop.f32.mrf.mxu1 }
 0x1a8   : > { %1784 = vmatmul.bf16.gmra.mxu2 %v1424_v19  ;;  %v806_v10 = vadd.f32 %v805_v60, %v717_v34  ;;  %v3756_v19 = vld [vmem:[#allocation5_spill] sm:$0xff] }
 0x1a9   : > { %v3527_v21 = vpop.f32.mrf.mxu3 }
 0x1aa   : > { %v858_v18 = vpack.c.bf16 %v806_v10, %v806_v10 }
 0x1ab   : > { %v1745_v17 = vpop.f32.mrf.mxu2 }
 0x1ac   : > { %v1835_v62 = vadd.f32 %v3467_v28, %v1745_v17  ;;  %v1402_v6 = vunpack.c.l.b16 %v858_v18  ;;  %v396_v17 = vld [vmem:[%s3744_s2 + $0xb0] sm:$0xff] }
 0x1ae   : > { %v1924_v1 = vadd.f32 %v3418_v13, %v1835_v62  ;;  %1997 = vmatmul.bf16.gmra.mxu0 %v1527_v9  ;;  %1888 = vmatmul.bf16.gmra.mxu3 %v3022_v23  ;;  %v394_v23 = vld [vmem:[%s3744_s2 + $0xa0] sm:$0xff] }
 0x1af   : > { %v807_v25 = vpop.f32.mrf.mxu1  ;;  %v722_v8 = vadd.f32 %v3469_v39, %v394_v23  ;;  %v3556_v39 = vpop.f32.mrf.mxu0 }
 0x1b0   : > { %vm2003_vm0 = vcmp.ge.f32.partialorder %v1924_v1, 0.0  ;;  %v2035_v26 = vmul.f32 0.22916667, %v1924_v1  ;;  %v808_v7 = vadd.f32 %v807_v25, %v719_v5  ;;  %v727_v5 = vadd.f32 %v3499_v2, %v396_v17 }
 0x1b1   : > { %v3538_v13 = vpop.f32.mrf.mxu3 }
 0x1b2   : > { %v2067_v16 = vsel %vm2003_vm0, %v1924_v1, %v2035_v26  ;;  %v859_v51 = vpack.c.bf16 %v808_v7, %v808_v7 }
 0x1b3   : > { %2099 = vst [vmem:[%s3747_s5] sm:$0xff] %v2067_v16  ;;  %v1747_v28 = vpop.f32.mrf.mxu2 }
 0x1b4   : > { %v1403_v55 = vunpack.c.l.b16 %v859_v51  ;;  %v1837_v40 = vadd.f32 %v3484_v30, %v1747_v28  ;;  %v395_v30 = vld [vmem:[%s3744_s2 + $0xa8] sm:$0xff] }
 0x1b5   : > { %v724_v44 = vadd.f32 %v3487_v57, %v395_v30 }
 0x1b6   : > { %v1425_v56 = vpack.c.b16 %v1403_v55, %v1402_v6  ;;  %v1926_v20 = vadd.f32 %v3432_v29, %v1837_v40  ;;  %v3757_v55 = vld [vmem:[#allocation4_spill] sm:$0xff] }
 0x1b7   : > { %v810_v48 = vpop.f32.mrf.mxu1  ;;  %v3569_v9 = vpop.f32.mrf.mxu0 }
 0x1b8   : > { %vm2004_vm1 = vcmp.ge.f32.partialorder %v1926_v20, 0.0  ;;  %v2036_v54 = vmul.f32 0.22916667, %v1926_v20  ;;  %1789 = vmatmul.bf16.gmra.mxu2 %v1425_v56  ;;  %v811_v42 = vadd.f32 %v810_v48, %v722_v8 }
 0x1b9   : > { %v3552_v37 = vpop.f32.mrf.mxu3 }
 0x1ba   : > { %v2068_v36 = vsel %vm2004_vm1, %v1926_v20, %v2036_v54  ;;  %v860_v24 = vpack.c.bf16 %v811_v42, %v811_v42 }
 0x1bb   : > { %2100 = vst [vmem:[%s3747_s5 + $0x8] sm:$0xff] %v2068_v36  ;;  %v1750_v29 = vpop.f32.mrf.mxu2  ;;  %v398_v36 = vld [vmem:[%s3744_s2 + $0xc0] sm:$0xff] }
 0x1bc   : > { %v1840_v47 = vadd.f32 %v3492_v35, %v1750_v29  ;;  %v1404_v61 = vunpack.c.l.b16 %v860_v24  ;;  %v732_v42 = vadd.f32 %v3363_v49, %v398_v36 }
 0x1be   : > { %v1929_v43 = vadd.f32 %v3455_v50, %v1840_v47  ;;  %1893 = vmatmul.bf16.gmra.mxu3 %v3756_v19 }
 0x1bf   : > { %v812_v46 = vpop.f32.mrf.mxu1  ;;  %v3584_v20 = vpop.f32.mrf.mxu0 }
 0x1c0   : > { %vm2005_vm2 = vcmp.ge.f32.partialorder %v1929_v43, 0.0  ;;  %v2037_v32 = vmul.f32 0.22916667, %v1929_v43  ;;  %v813_v63 = vadd.f32 %v812_v46, %v724_v44 }
 0x1c1   : > { %v3563_v52 = vpop.f32.mrf.mxu3 }
 0x1c2   : > { %v2069_v0 = vsel %vm2005_vm2, %v1929_v43, %v2037_v32  ;;  %v861_v60 = vpack.c.bf16 %v813_v63, %v813_v63 }
 0x1c3   : > { %2101 = vst [vmem:[%s3747_s5 + $0x10] sm:$0xff] %v2069_v0  ;;  %v1752_v35 = vpop.f32.mrf.mxu2 }
 0x1c4   : > { %v1405_v57 = vunpack.c.l.b16 %v861_v60  ;;  %v1842_v50 = vadd.f32 %v3509_v11, %v1752_v35  ;;  %v397_v11 = vld [vmem:[%s3744_s2 + $0xb8] sm:$0xff]  ;;  %v3758_v35 = vld [vmem:[#allocation3_spill] sm:$0xff] }
 0x1c5   : > { %v729_v7 = vadd.f32 %v3513_v59, %v397_v11 }
 0x1c6   : > { %v1426_v34 = vpack.c.b16 %v1405_v57, %v1404_v61  ;;  %v1931_v3 = vadd.f32 %v3471_v45, %v1842_v50 }
 0x1c7   : > { %v815_v10 = vpop.f32.mrf.mxu1  ;;  %v3606_v24 = vpop.f32.mrf.mxu0 }
 0x1c8   : > { %vm2006_vm3 = vcmp.ge.f32.partialorder %v1931_v3, 0.0  ;;  %v2038_v62 = vmul.f32 0.22916667, %v1931_v3  ;;  %1794 = vmatmul.bf16.gmra.mxu2 %v1426_v34  ;;  %v816_v25 = vadd.f32 %v815_v10, %v727_v5  ;;  %v400_v10 = vld [vmem:[%s3744_s2 + $0xd0] sm:$0xff] }
 0x1c9   : > { %v3579_v26 = vpop.f32.mrf.mxu3  ;;  %v737_v11 = vadd.f32 %v3384_v41, %v400_v10  ;;  %v405_v10 = vld [vmem:[%s3744_s2 + $0xf8] sm:$0xff] }
 0x1ca   : > { %v2070_v1 = vsel %vm2006_vm3, %v1931_v3, %v2038_v62  ;;  %v862_v51 = vpack.c.bf16 %v816_v25, %v816_v25 }
 0x1cb   : > { %2102 = vst [vmem:[%s3747_s5 + $0x18] sm:$0xff] %v2070_v1  ;;  %v1755_v45 = vpop.f32.mrf.mxu2 }
 0x1cc   : > { %v1845_v18 = vadd.f32 %v3517_v33, %v1755_v45  ;;  %v1406_v23 = vunpack.c.l.b16 %v862_v51 }
 0x1ce   : > { %v1934_v16 = vadd.f32 %v3489_v31, %v1845_v18  ;;  %1898 = vmatmul.bf16.gmra.mxu3 %v3757_v55 }
 0x1cf   : > { %v817_v2 = vpop.f32.mrf.mxu1  ;;  %v3621_v62 = vpop.f32.mrf.mxu0 }
 0x1d0   : > { %vm2007_vm4 = vcmp.ge.f32.partialorder %v1934_v16, 0.0  ;;  %v2039_v28 = vmul.f32 0.22916667, %v1934_v16  ;;  %v818_v6 = vadd.f32 %v817_v2, %v729_v7 }
 0x1d1   : > { %v3590_v48 = vpop.f32.mrf.mxu3 }
 0x1d2   : > { %v2071_v40 = vsel %vm2007_vm4, %v1934_v16, %v2039_v28  ;;  %v863_v56 = vpack.c.bf16 %v818_v6, %v818_v6 }
 0x1d3   : > { %2103 = vst [vmem:[%s3747_s5 + $0x20] sm:$0xff] %v2071_v40  ;;  %v1757_v33 = vpop.f32.mrf.mxu2  ;;  %v3759_v40 = vld [vmem:[#allocation2_spill] sm:$0xff] }
 0x1d4   : > { %v1407_v59 = vunpack.c.l.b16 %v863_v56  ;;  %v1847_v31 = vadd.f32 %v3527_v21, %v1757_v33  ;;  %v399_v21 = vld [vmem:[%s3744_s2 + $0xc8] sm:$0xff] }
 0x1d5   : > { %v734_v32 = vadd.f32 %v3375_v15, %v399_v21 }
 0x1d6   : > { %v1427_v54 = vpack.c.b16 %v1407_v59, %v1406_v23  ;;  %v1936_v8 = vadd.f32 %v3502_v58, %v1847_v31 }
 0x1d7   : > { %v820_v30 = vpop.f32.mrf.mxu1  ;;  %v3635_v55 = vpop.f32.mrf.mxu0 }
 0x1d8   : > { %vm2008_vm5 = vcmp.ge.f32.partialorder %v1936_v8, 0.0  ;;  %v2040_v29 = vmul.f32 0.22916667, %v1936_v8  ;;  %1799 = vmatmul.bf16.gmra.mxu2 %v1427_v54  ;;  %v821_v44 = vadd.f32 %v820_v30, %v732_v42  ;;  %v402_v54 = vld [vmem:[%s3744_s2 + $0xe0] sm:$0xff] }
 0x1d9   : > { %v3604_v46 = vpop.f32.mrf.mxu3 }
 0x1da   : > { %v2072_v47 = vsel %vm2008_vm5, %v1936_v8, %v2040_v29  ;;  %v864_v19 = vpack.c.bf16 %v821_v44, %v821_v44  ;;  %v742_v29 = vadd.f32 %v3409_v38, %v402_v54 }
 0x1db   : > { %2104 = vst [vmem:[%s3747_s5 + $0x28] sm:$0xff] %v2072_v47  ;;  %v1760_v58 = vpop.f32.mrf.mxu2 }
 0x1dc   : > { %v1850_v43 = vadd.f32 %v3538_v13, %v1760_v58  ;;  %v1408_v50 = vunpack.c.l.b16 %v864_v19 }
 0x1de   : > { %v1939_v49 = vadd.f32 %v3515_v4, %v1850_v43  ;;  %1903 = vmatmul.bf16.gmra.mxu3 %v3758_v35 }
 0x1df   : > { %v822_v63 = vpop.f32.mrf.mxu1  ;;  %v1958_v47 = vpop.f32.mrf.mxu0 }
 0x1e0   : > { %vm2009_vm6 = vcmp.ge.f32.partialorder %v1939_v49, 0.0  ;;  %v2041_v0 = vmul.f32 0.22916667, %v1939_v49  ;;  %v823_v60 = vadd.f32 %v822_v63, %v734_v32 }
 0x1e1   : > { %v3615_v3 = vpop.f32.mrf.mxu3 }
 0x1e2   : > { %v2073_v61 = vsel %vm2009_vm6, %v1939_v49, %v2041_v0  ;;  %v865_v57 = vpack.c.bf16 %v823_v60, %v823_v60 }
 0x1e3   : > { %2105 = vst [vmem:[%s3747_s5 + $0x30] sm:$0xff] %v2073_v61  ;;  %v1762_v13 = vpop.f32.mrf.mxu2 }
 0x1e4   : > { %v1409_v34 = vunpack.c.l.b16 %v865_v57  ;;  %v1852_v15 = vadd.f32 %v3552_v37, %v1762_v13  ;;  %v401_v37 = vld [vmem:[%s3744_s2 + $0xd8] sm:$0xff] }
 0x1e5   : > { %v739_v7 = vadd.f32 %v3397_v12, %v401_v37 }
 0x1e6   : > { %v1428_v4 = vpack.c.b16 %v1409_v34, %v1408_v50  ;;  %v1941_v17 = vadd.f32 %v3529_v27, %v1852_v15  ;;  %v404_v50 = vld [vmem:[%s3744_s2 + $0xf0] sm:$0xff] }
 0x1e7   : > { %v825_v5 = vpop.f32.mrf.mxu1 }
 0x1e8   : > { %vm2010_vm7 = vcmp.ge.f32.partialorder %v1941_v17, 0.0  ;;  %v2042_v1 = vmul.f32 0.22916667, %v1941_v17  ;;  %1804 = vmatmul.bf16.gmra.mxu2 %v1428_v4  ;;  %v826_v25 = vadd.f32 %v825_v5, %v737_v11  ;;  %v747_v4 = vadd.f32 %v3440_v53, %v404_v50 }
 0x1e9   : > { %v3633_v51 = vpop.f32.mrf.mxu3  ;;  %v749_v11 = vadd.f32 %v3457_v22, %v405_v10 }
 0x1ea   : > { %v2074_v45 = vsel %vm2010_vm7, %v1941_v17, %v2042_v1  ;;  %v866_v41 = vpack.c.bf16 %v826_v25, %v826_v25 }
 0x1eb   : > { %2106 = vst [vmem:[%s3747_s5 + $0x38] sm:$0xff] %v2074_v45  ;;  %v1765_v27 = vpop.f32.mrf.mxu2 }
 0x1ec   : > { %v1855_v18 = vadd.f32 %v3563_v52, %v1765_v27  ;;  %v1410_v52 = vunpack.c.l.b16 %v866_v41 }
 0x1ee   : > { %v1944_v16 = vadd.f32 %v3556_v39, %v1855_v18  ;;  %1908 = vmatmul.bf16.gmra.mxu3 %v3759_v40 }
 0x1ef   : > { %v827_v2 = vpop.f32.mrf.mxu1 }
 0x1f0   : > { %vm2011_vm8 = vcmp.ge.f32.partialorder %v1944_v16, 0.0  ;;  %v2043_v28 = vmul.f32 0.22916667, %v1944_v16  ;;  %v828_v6 = vadd.f32 %v827_v2, %v739_v7 }
 0x1f1   : > { %v3646_v30 = vpop.f32.mrf.mxu3 }
 0x1f2   : > { %v2075_v56 = vsel %vm2011_vm8, %v1944_v16, %v2043_v28  ;;  %v867_v33 = vpack.c.bf16 %v828_v6, %v828_v6 }
 0x1f3   : > { %2107 = vst [vmem:[%s3747_s5 + $0x40] sm:$0xff] %v2075_v56  ;;  %v1767_v12 = vpop.f32.mrf.mxu2 }
 0x1f4   : > { %v1411_v39 = vunpack.c.l.b16 %v867_v33  ;;  %v1857_v23 = vadd.f32 %v3579_v26, %v1767_v12  ;;  %v403_v26 = vld [vmem:[%s3744_s2 + $0xe8] sm:$0xff] }
 0x1f5   : > { %v744_v44 = vadd.f32 %v3426_v14, %v403_v26  ;;  %v1960_v14 = vpop.f32.mrf.mxu0 }
 0x1f6   : > { %v1429_v59 = vpack.c.b16 %v1411_v39, %v1410_v52  ;;  %v1946_v31 = vadd.f32 %v3569_v9, %v1857_v23 }
 0x1f7   : > { %v830_v8 = vpop.f32.mrf.mxu1 }
 0x1f8   : > { %vm2012_vm9 = vcmp.ge.f32.partialorder %v1946_v31, 0.0  ;;  %v2044_v36 = vmul.f32 0.22916667, %v1946_v31  ;;  %1809 = vmatmul.bf16.gmra.mxu2 %v1429_v59  ;;  %v831_v21 = vadd.f32 %v830_v8, %v742_v29 }
 0x1f9   : > { %v1871_v35 = vpop.f32.mrf.mxu3 }
 0x1fa   : > { %v2076_v42 = vsel %vm2012_vm9, %v1946_v31, %v2044_v36  ;;  %v868_v38 = vpack.c.bf16 %v831_v21, %v831_v21 }
 0x1fb   : > { %2108 = vst [vmem:[%s3747_s5 + $0x48] sm:$0xff] %v2076_v42  ;;  %v1770_v9 = vpop.f32.mrf.mxu2 }
 0x1fc   : > { %v1860_v58 = vadd.f32 %v3590_v48, %v1770_v9  ;;  %v1412_v61 = vunpack.c.l.b16 %v868_v38 }
 0x1fd   : > { %v1963_v37 = vpop.f32.mrf.mxu0 }
 0x1fe   : > { %v1949_v43 = vadd.f32 %v3584_v20, %v1860_v58 }
 0x1ff   : > { %v832_v32 = vpop.f32.mrf.mxu1 }
 0x200   : > { %vm2013_vm10 = vcmp.ge.f32.partialorder %v1949_v43, 0.0  ;;  %v2045_v49 = vmul.f32 0.22916667, %v1949_v43  ;;  %v833_v63 = vadd.f32 %v832_v32, %v744_v44 }
 0x201   : > { %v1874_v1 = vpop.f32.mrf.mxu3 }
 0x202   : > { %v2077_v19 = vsel %vm2013_vm10, %v1949_v43, %v2045_v49  ;;  %v869_v0 = vpack.c.bf16 %v833_v63, %v833_v63 }
 0x203   : > { %2109 = vst [vmem:[%s3747_s5 + $0x50] sm:$0xff] %v2077_v19  ;;  %v1772_v60 = vpop.f32.mrf.mxu2 }
 0x204   : > { %v1413_v57 = vunpack.c.l.b16 %v869_v0  ;;  %v1862_v48 = vadd.f32 %v3604_v46, %v1772_v60 }
 0x205   : > { %v1965_v56 = vpop.f32.mrf.mxu0 }
 0x206   : > { %v1430_v13 = vpack.c.b16 %v1413_v57, %v1412_v61  ;;  %v1951_v20 = vadd.f32 %v3606_v24, %v1862_v48 }
 0x207   : > { %v835_v34 = vpop.f32.mrf.mxu1 }
 0x208   : > { %vm2014_vm11 = vcmp.ge.f32.partialorder %v1951_v20, 0.0  ;;  %v2046_v15 = vmul.f32 0.22916667, %v1951_v20  ;;  %1814 = vmatmul.bf16.gmra.mxu2 %v1430_v13  ;;  %v836_v24 = vadd.f32 %v835_v34, %v747_v4 }
 0x209   : > { %v1876_v6 = vpop.f32.mrf.mxu3 }
 0x20a   : > { %v2078_v17 = vsel %vm2014_vm11, %v1951_v20, %v2046_v15  ;;  %v870_v27 = vpack.c.bf16 %v836_v24, %v836_v24 }
 0x20b   : > { %2110 = vst [vmem:[%s3747_s5 + $0x58] sm:$0xff] %v2078_v17  ;;  %v1775_v46 = vpop.f32.mrf.mxu2 }
 0x20c   : > { %v1865_v5 = vadd.f32 %v3615_v3, %v1775_v46  ;;  %v1414_v41 = vunpack.c.l.b16 %v870_v27 }
 0x20d   : > { %v1968_v31 = vpop.f32.mrf.mxu0 }
 0x20e   : > { %v1954_v45 = vadd.f32 %v3621_v62, %v1865_v5 }
 0x20f   : > { %v837_v53 = vpop.f32.mrf.mxu1 }
 0x210   : > { %vm2015_vm12 = vcmp.ge.f32.partialorder %v1954_v45, 0.0  ;;  %v2047_v25 = vmul.f32 0.22916667, %v1954_v45  ;;  %v838_v18 = vadd.f32 %v837_v53, %v749_v11 }
 0x212   : > { %v2079_v7 = vsel %vm2015_vm12, %v1954_v45, %v2047_v25  ;;  %v871_v16 = vpack.c.bf16 %v838_v18, %v838_v18 }
 0x213   : > { %2111 = vst [vmem:[%s3747_s5 + $0x60] sm:$0xff] %v2079_v7  ;;  %v1777_v2 = vpop.f32.mrf.mxu2 }
 0x214   : > { %v1415_v3 = vunpack.c.l.b16 %v871_v16  ;;  %v1867_v28 = vadd.f32 %v3633_v51, %v1777_v2  ;;  %v1879_v51 = vpop.f32.mrf.mxu3 }
 0x216   : > { %v1431_v22 = vpack.c.b16 %v1415_v3, %v1414_v41  ;;  %v1956_v62 = vadd.f32 %v3635_v55, %v1867_v28 }
 0x218   : > { %vm2016_vm13 = vcmp.ge.f32.partialorder %v1956_v62, 0.0  ;;  %v2048_v40 = vmul.f32 0.22916667, %v1956_v62  ;;  %1819 = vmatmul.bf16.gmra.mxu2 %v1431_v22 }
 0x21a   : > { %v2080_v33 = vsel %vm2016_vm13, %v1956_v62, %v2048_v40 }
 0x21b   : > { %2112 = vst [vmem:[%s3747_s5 + $0x68] sm:$0xff] %v2080_v33  ;;  %v1780_v12 = vpop.f32.mrf.mxu2 }
 0x21c   : > { %v1870_v52 = vadd.f32 %v3646_v30, %v1780_v12  ;;  %v1881_v42 = vpop.f32.mrf.mxu3 }
 0x21e   : > { %v1959_v39 = vadd.f32 %v1958_v47, %v1870_v52  ;;  %v1970_v47 = vpop.f32.mrf.mxu0 }
 0x220   : > { %vm2017_vm14 = vcmp.ge.f32.partialorder %v1959_v39, 0.0  ;;  %v2049_v23 = vmul.f32 0.22916667, %v1959_v39 }
 0x222   : > { %v2081_v59 = vsel %vm2017_vm14, %v1959_v39, %v2049_v23 }
 0x223   : > { %2113 = vst [vmem:[%s3747_s5 + $0x70] sm:$0xff] %v2081_v59  ;;  %v1782_v55 = vpop.f32.mrf.mxu2 }
 0x224   : > { %v1872_v54 = vadd.f32 %v1871_v35, %v1782_v55  ;;  %v1884_v32 = vpop.f32.mrf.mxu3 }
 0x226   : > { %v1961_v8 = vadd.f32 %v1960_v14, %v1872_v54  ;;  %v1973_v49 = vpop.f32.mrf.mxu0 }
 0x228   : > { %vm2018_vm15 = vcmp.ge.f32.partialorder %v1961_v8, 0.0  ;;  %v2050_v36 = vmul.f32 0.22916667, %v1961_v8 }
 0x22a   : > { %v2082_v29 = vsel %vm2018_vm15, %v1961_v8, %v2050_v36 }
 0x22b   : > { %2114 = vst [vmem:[%s3747_s5 + $0x78] sm:$0xff] %v2082_v29  ;;  %v1785_v30 = vpop.f32.mrf.mxu2 }
 0x22c   : > { %v1875_v26 = vadd.f32 %v1874_v1, %v1785_v30  ;;  %v1886_v61 = vpop.f32.mrf.mxu3 }
 0x22e   : > { %v1964_v9 = vadd.f32 %v1963_v37, %v1875_v26  ;;  %v1975_v48 = vpop.f32.mrf.mxu0 }
 0x230   : > { %vm2019_vm0 = vcmp.ge.f32.partialorder %v1964_v9, 0.0  ;;  %v2051_v21 = vmul.f32 0.22916667, %v1964_v9 }
 0x232   : > { %v2083_v58 = vsel %vm2019_vm0, %v1964_v9, %v2051_v21 }
 0x233   : > { %2115 = vst [vmem:[%s3747_s5 + $0x80] sm:$0xff] %v2083_v58  ;;  %v1787_v44 = vpop.f32.mrf.mxu2 }
 0x234   : > { %v1877_v43 = vadd.f32 %v1876_v6, %v1787_v44  ;;  %v1889_v15 = vpop.f32.mrf.mxu3 }
 0x236   : > { %v1966_v38 = vadd.f32 %v1965_v56, %v1877_v43  ;;  %v1978_v17 = vpop.f32.mrf.mxu0 }
 0x238   : > { %vm2020_vm1 = vcmp.ge.f32.partialorder %v1966_v38, 0.0  ;;  %v2052_v63 = vmul.f32 0.22916667, %v1966_v38 }
 0x23a   : > { %v2084_v19 = vsel %vm2020_vm1, %v1966_v38, %v2052_v63 }
 0x23b   : > { %2116 = vst [vmem:[%s3747_s5 + $0x88] sm:$0xff] %v2084_v19  ;;  %v1790_v0 = vpop.f32.mrf.mxu2 }
 0x23c   : > { %v1880_v60 = vadd.f32 %v1879_v51, %v1790_v0  ;;  %v1891_v45 = vpop.f32.mrf.mxu3 }
 0x23e   : > { %v1969_v35 = vadd.f32 %v1968_v31, %v1880_v60  ;;  %v1980_v53 = vpop.f32.mrf.mxu0 }
 0x240   : > { %vm2021_vm2 = vcmp.ge.f32.partialorder %v1969_v35, 0.0  ;;  %v2053_v57 = vmul.f32 0.22916667, %v1969_v35 }
 0x242   : > { %v2085_v14 = vsel %vm2021_vm2, %v1969_v35, %v2053_v57 }
 0x243   : > { %2117 = vst [vmem:[%s3747_s5 + $0x90] sm:$0xff] %v2085_v14  ;;  %v1792_v13 = vpop.f32.mrf.mxu2 }
 0x244   : > { %v1882_v20 = vadd.f32 %v1881_v42, %v1792_v13  ;;  %v1894_v2 = vpop.f32.mrf.mxu3 }
 0x246   : > { %v1971_v50 = vadd.f32 %v1970_v47, %v1882_v20  ;;  %v1983_v3 = vpop.f32.mrf.mxu0 }
 0x248   : > { %vm2022_vm3 = vcmp.ge.f32.partialorder %v1971_v50, 0.0  ;;  %v2054_v34 = vmul.f32 0.22916667, %v1971_v50 }
 0x24a   : > { %v2086_v4 = vsel %vm2022_vm3, %v1971_v50, %v2054_v34 }
 0x24b   : > { %2118 = vst [vmem:[%s3747_s5 + $0x98] sm:$0xff] %v2086_v4  ;;  %v1795_v10 = vpop.f32.mrf.mxu2 }
 0x24c   : > { %v1885_v46 = vadd.f32 %v1884_v32, %v1795_v10  ;;  %v1896_v56 = vpop.f32.mrf.mxu3 }
 0x24e   : > { %v1974_v24 = vadd.f32 %v1973_v49, %v1885_v46  ;;  %v1985_v12 = vpop.f32.mrf.mxu0 }
 0x250   : > { %vm2023_vm4 = vcmp.ge.f32.partialorder %v1974_v24, 0.0  ;;  %v2055_v5 = vmul.f32 0.22916667, %v1974_v24 }
 0x252   : > { %v2087_v1 = vsel %vm2023_vm4, %v1974_v24, %v2055_v5 }
 0x253   : > { %2119 = vst [vmem:[%s3747_s5 + $0xa0] sm:$0xff] %v2087_v1  ;;  %v1797_v11 = vpop.f32.mrf.mxu2 }
 0x254   : > { %v1887_v37 = vadd.f32 %v1886_v61, %v1797_v11  ;;  %v1899_v31 = vpop.f32.mrf.mxu3 }
 0x256   : > { %v1976_v27 = vadd.f32 %v1975_v48, %v1887_v37  ;;  %v1988_v54 = vpop.f32.mrf.mxu0 }
 0x258   : > { %vm2024_vm5 = vcmp.ge.f32.partialorder %v1976_v27, 0.0  ;;  %v2056_v25 = vmul.f32 0.22916667, %v1976_v27 }
 0x25a   : > { %v2088_v18 = vsel %vm2024_vm5, %v1976_v27, %v2056_v25 }
 0x25b   : > { %2120 = vst [vmem:[%s3747_s5 + $0xa8] sm:$0xff] %v2088_v18  ;;  %v1800_v7 = vpop.f32.mrf.mxu2 }
 0x25c   : > { %v1890_v16 = vadd.f32 %v1889_v15, %v1800_v7  ;;  %v1901_v47 = vpop.f32.mrf.mxu3 }
 0x25e   : > { %v1979_v41 = vadd.f32 %v1978_v17, %v1890_v16  ;;  %v1990_v21 = vpop.f32.mrf.mxu0 }
 0x260   : > { %vm2025_vm6 = vcmp.ge.f32.partialorder %v1979_v41, 0.0  ;;  %v2057_v28 = vmul.f32 0.22916667, %v1979_v41 }
 0x262   : > { %v2089_v22 = vsel %vm2025_vm6, %v1979_v41, %v2057_v28 }
 0x263   : > { %2121 = vst [vmem:[%s3747_s5 + $0xb0] sm:$0xff] %v2089_v22  ;;  %v1802_v62 = vpop.f32.mrf.mxu2 }
 0x264   : > { %v1892_v6 = vadd.f32 %v1891_v45, %v1802_v62  ;;  %v1904_v49 = vpop.f32.mrf.mxu3 }
 0x266   : > { %v1981_v40 = vadd.f32 %v1980_v53, %v1892_v6  ;;  %v1993_v19 = vpop.f32.mrf.mxu0 }
 0x268   : > { %vm2026_vm7 = vcmp.ge.f32.partialorder %v1981_v40, 0.0  ;;  %v2058_v33 = vmul.f32 0.22916667, %v1981_v40 }
 0x26a   : > { %v2090_v52 = vsel %vm2026_vm7, %v1981_v40, %v2058_v33 }
 0x26b   : > { %2122 = vst [vmem:[%s3747_s5 + $0xb8] sm:$0xff] %v2090_v52  ;;  %v1805_v39 = vpop.f32.mrf.mxu2 }
 0x26c   : > { %v1895_v23 = vadd.f32 %v1894_v2, %v1805_v39  ;;  %v1906_v48 = vpop.f32.mrf.mxu3 }
 0x26e   : > { %v1984_v51 = vadd.f32 %v1983_v3, %v1895_v23  ;;  %v1995_v13 = vpop.f32.mrf.mxu0 }
 0x270   : > { %vm2027_vm8 = vcmp.ge.f32.partialorder %v1984_v51, 0.0  ;;  %v2059_v59 = vmul.f32 0.22916667, %v1984_v51 }
 0x272   : > { %v2091_v55 = vsel %vm2027_vm8, %v1984_v51, %v2059_v59 }
 0x273   : > { %2123 = vst [vmem:[%s3747_s5 + $0xc0] sm:$0xff] %v2091_v55  ;;  %v1807_v8 = vpop.f32.mrf.mxu2 }
 0x274   : > { %v1897_v36 = vadd.f32 %v1896_v56, %v1807_v8  ;;  %v1909_v17 = vpop.f32.mrf.mxu3 }
 0x276   : > { %v1986_v29 = vadd.f32 %v1985_v12, %v1897_v36  ;;  %v1998_v46 = vpop.f32.mrf.mxu0 }
 0x278   : > { %vm2028_vm9 = vcmp.ge.f32.partialorder %v1986_v29, 0.0  ;;  %v2060_v30 = vmul.f32 0.22916667, %v1986_v29 }
 0x27a   : > { %v2092_v42 = vsel %vm2028_vm9, %v1986_v29, %v2060_v30 }
 0x27b   : > { %2124 = vst [vmem:[%s3747_s5 + $0xc8] sm:$0xff] %v2092_v42  ;;  %v1810_v26 = vpop.f32.mrf.mxu2 }
 0x27c   : > { %v1900_v9 = vadd.f32 %v1899_v31, %v1810_v26  ;;  %v1911_v37 = vpop.f32.mrf.mxu3 }
 0x27e   : > { %v1989_v58 = vadd.f32 %v1988_v54, %v1900_v9  ;;  %v2000_v25 = vpop.f32.mrf.mxu0 }
 0x280   : > { %vm2029_vm10 = vcmp.ge.f32.partialorder %v1989_v58, 0.0  ;;  %v2061_v44 = vmul.f32 0.22916667, %v1989_v58 }
 0x282   : > { %v2093_v43 = vsel %vm2029_vm10, %v1989_v58, %v2061_v44 }
 0x283   : > { %2125 = vst [vmem:[%s3747_s5 + $0xd0] sm:$0xff] %v2093_v43  ;;  %v1812_v32 = vpop.f32.mrf.mxu2 }
 0x284   : > { %v1902_v38 = vadd.f32 %v1901_v47, %v1812_v32 }
 0x286   : > { %v1991_v63 = vadd.f32 %v1990_v21, %v1902_v38 }
 0x288   : > { %vm2030_vm11 = vcmp.ge.f32.partialorder %v1991_v63, 0.0  ;;  %v2062_v0 = vmul.f32 0.22916667, %v1991_v63 }
 0x28a   : > { %v2094_v60 = vsel %vm2030_vm11, %v1991_v63, %v2062_v0 }
 0x28b   : > { %2126 = vst [vmem:[%s3747_s5 + $0xd8] sm:$0xff] %v2094_v60  ;;  %v1815_v35 = vpop.f32.mrf.mxu2 }
 0x28c   : > { %v1905_v61 = vadd.f32 %v1904_v49, %v1815_v35 }
 0x28e   : > { %v1994_v57 = vadd.f32 %v1993_v19, %v1905_v61 }
 0x290   : > { %vm2031_vm12 = vcmp.ge.f32.partialorder %v1994_v57, 0.0  ;;  %v2063_v14 = vmul.f32 0.22916667, %v1994_v57 }
 0x292   : > { %v2095_v20 = vsel %vm2031_vm12, %v1994_v57, %v2063_v14 }
 0x293   : > { %2127 = vst [vmem:[%s3747_s5 + $0xe0] sm:$0xff] %v2095_v20  ;;  %v1817_v50 = vpop.f32.mrf.mxu2 }
 0x294   : > { %v1907_v34 = vadd.f32 %v1906_v48, %v1817_v50 }
 0x296   : > { %v1996_v15 = vadd.f32 %v1995_v13, %v1907_v34 }
 0x298   : > { %vm2032_vm13 = vcmp.ge.f32.partialorder %v1996_v15, 0.0  ;;  %v2064_v4 = vmul.f32 0.22916667, %v1996_v15 }
 0x29a   : > { %v2096_v10 = vsel %vm2032_vm13, %v1996_v15, %v2064_v4 }
 0x29b   : > { %2128 = vst [vmem:[%s3747_s5 + $0xe8] sm:$0xff] %v2096_v10  ;;  %v1820_v24 = vpop.f32.mrf.mxu2 }
 0x29c   : > { %v1910_v5 = vadd.f32 %v1909_v17, %v1820_v24 }
 0x29e   : > { %v1999_v1 = vadd.f32 %v1998_v46, %v1910_v5 }
 0x2a0   : > { %vm2033_vm14 = vcmp.ge.f32.partialorder %v1999_v1, 0.0  ;;  %v2065_v11 = vmul.f32 0.22916667, %v1999_v1 }
 0x2a2   : > { %v2097_v45 = vsel %vm2033_vm14, %v1999_v1, %v2065_v11 }
 0x2a3   : > { %2129 = vst [vmem:[%s3747_s5 + $0xf0] sm:$0xff] %v2097_v45  ;;  %v1822_v53 = vpop.f32.mrf.mxu2 }
 0x2a4   : > { %v1912_v27 = vadd.f32 %v1911_v37, %v1822_v53 }
 0x2a6   : > { %v2001_v18 = vadd.f32 %v2000_v25, %v1912_v27 }
 0x2a8   : > { %vm2034_vm15 = vcmp.ge.f32.partialorder %v2001_v18, 0.0  ;;  %v2066_v7 = vmul.f32 0.22916667, %v2001_v18 }
 0x2aa   : > { %v2098_v16 = vsel %vm2034_vm15, %v2001_v18, %v2066_v7 }
 0x2ab   : > { %2130 = vst [vmem:[%s3747_s5 + $0xf8] sm:$0xff] %v2098_v16 }
 0x2ac PF: > { %s15_s18 = sadd.s32 1, %s2491_s18  }
 0x2ad   : > { %p12_p5 = scmp.ge.s32.totalorder %s15_s18, 4  }
 0x2af   :  { %14 = sbr.rel (!%p12_p5) target bundleno = 1 (0x1), region = 70 }

</bundles_post_ra>
